<compile_context>
chip_gen: v7x
topology: tpu7x:2x2x1
jax: 0.10.0
libtpu: 0.0.40
codegen_flags: <defaults>
</compile_context>

<pallas_src>
import jax
import jax.numpy as jnp
import numpy as np
from jax import lax
from jax.experimental import pallas as pl
from jax.experimental.pallas import tpu as pltpu

# Interior of the padded conv2 scratch starts at this sublane offset so the
# large conv1 store is aligned for bf16 sublane packing (16 rows / vreg).
_PAD_ALIGN = 16


def _bottleneck_kernel(top_ref, bot_ref,            # scalar prefetch (index maps only)
                       xm_ref, xt_ref, xb_ref,      # x row-tile + 1-row halos (bf16)
                       w1_ref, s1_ref, b1_ref,
                       w2_ref, s2_ref, b2_ref,
                       w3_ref, s3_ref, b3_ref,
                       o_ref, pad_ref):
    del top_ref, bot_ref
    _, TH, W, Cin = xm_ref.shape
    planes = w1_ref.shape[1]
    Cout = w3_ref.shape[1]
    L = pad_ref.shape[1] - W - 1            # interior sublane offset (== _PAD_ALIGN)
    r = pl.program_id(1)
    last_r = pl.num_programs(1) - 1
    f32 = jnp.float32
    bf16 = jnp.bfloat16

    w1 = w1_ref[...]
    s1 = s1_ref[...]
    b1 = b1_ref[...]

    # ---- conv1 (1x1) + BN1 + ReLU into the bf16 padded scratch --------------
    xm = xm_ref[...].reshape(TH * W, Cin)
    h1 = jnp.dot(xm, w1, preferred_element_type=f32)
    h1 = jnp.maximum(h1 * s1 + b1, 0.0).astype(bf16)
    pad_ref[1:TH + 1, L:L + W, :] = h1.reshape(TH, W, planes)   # aligned store

    # Both 1-row halos fused into a single (2W, Cin) matmul.
    x_tb = jnp.concatenate([xt_ref[...].reshape(W, Cin),
                            xb_ref[...].reshape(W, Cin)], axis=0)
    h_tb = jnp.dot(x_tb, w1, preferred_element_type=f32)
    h_tb = jnp.maximum(h_tb * s1 + b1, 0.0).astype(bf16)
    pad_ref[0:1, L:L + W, :] = h_tb[:W].reshape(1, W, planes)
    pad_ref[TH + 1:TH + 2, L:L + W, :] = h_tb[W:].reshape(1, W, planes)

    # conv2's zero padding: the two 1-wide columns every step (cheap strips);
    # the halo rows are zeroed only on the image-border tiles.
    zcol = jnp.zeros((TH + 2, 1, planes), bf16)
    pad_ref[:, L - 1:L, :] = zcol
    pad_ref[:, L + W:L + W + 1, :] = zcol

    @pl.when(r == 0)
    def _():
        pad_ref[0:1, L:L + W, :] = jnp.zeros((1, W, planes), bf16)

    @pl.when(r == last_r)
    def _():
        pad_ref[TH + 1:TH + 2, L:L + W, :] = jnp.zeros((1, W, planes), bf16)

    # ---- conv2 (3x3, stride 1, pad 1) + BN2 + ReLU --------------------------
    # Width taps folded into the contraction dim:
    #   p3[y, x, kx*planes + c] = pad[y, (L-1) + x + kx, c]
    # then one matmul per ky with K = 3*planes (w2 pre-reshaped accordingly).
    p3 = jnp.concatenate([pad_ref[:, L - 1:L - 1 + W, :],
                          pad_ref[:, L:L + W, :],
                          pad_ref[:, L + 1:L + 1 + W, :]], axis=-1)
    acc = jnp.dot(p3[0:TH].reshape(TH * W, 3 * planes), w2_ref[0],
                  preferred_element_type=f32)
    acc = acc + jnp.dot(p3[1:TH + 1].reshape(TH * W, 3 * planes), w2_ref[1],
                        preferred_element_type=f32)
    acc = acc + jnp.dot(p3[2:TH + 2].reshape(TH * W, 3 * planes), w2_ref[2],
                        preferred_element_type=f32)
    h2 = jnp.maximum(acc * s2_ref[...] + b2_ref[...], 0.0).astype(bf16)

    # ---- conv3 (1x1) + BN3, identity residual, final ReLU -------------------
    h3 = jnp.dot(h2, w3_ref[...], preferred_element_type=f32)
    h3 = h3 * s3_ref[...] + b3_ref[...]
    out = jnp.maximum(h3 + xm.astype(f32), 0.0)
    o_ref[...] = out.reshape(1, TH, W, Cout).astype(o_ref.dtype)


def _default_tile_h(H, max_tile=32):
    """Largest divisor of H that is <= max_tile, preferring >=2 row tiles."""
    divs = [d for d in range(1, H + 1) if H % d == 0]
    good = [d for d in divs if d <= max_tile and H // d >= 2 and d >= 8]
    if good:
        return max(good)
    small = [d for d in divs if d <= max_tile]
    return max(small) if small else H


def _const_spec(a):
    """Full-array spec with a constant index map (loop-invariant operand).

    Requests single buffering (no point double-buffering data that is never
    re-fetched); falls back to the default spec if pipeline_mode/Buffered is
    unavailable in this JAX version.
    """
    nd = a.ndim
    idx = lambda *_, _nd=nd: (0,) * _nd
    try:
        return pl.BlockSpec(a.shape, idx, pipeline_mode=pl.Buffered(buffer_count=1))
    except Exception:  # pragma: no cover - older JAX without pipeline_mode
        return pl.BlockSpec(a.shape, idx)


def _vmem_limit_bytes(TH, W, Wp, Cin, planes, Cout):
    """Conservative per-step VMEM footprint -> scoped-vmem request (<=48 MiB)."""
    bf = 2
    # double-buffered activation streams (x tile, 2 halo rows, output tile)
    act = 2 * (TH * W * Cin + 2 * W * Cin + TH * W * Cout) * bf
    # weights + folded BN (counted double-buffered to stay conservative)
    wgt = 2 * ((Cin * planes + 9 * planes * planes + planes * Cout) * bf
               + (2 * planes + 2 * planes + 2 * Cout) * 4)
    scratch = (TH + 2) * Wp * planes * bf
    # in-kernel temporaries: p3 im2col + a few f32 (TH*W, C) intermediates
    tmp = (TH + 2) * W * 3 * planes * bf + 3 * TH * W * max(planes, Cout) * 4
    est = act + wgt + scratch + tmp
    assert est <= 44 * 1024 * 1024, "row tile too large for per-core VMEM; lower tile_h"
    # Cap at 48 MiB: leaves headroom on v7x (64 MiB/TC); far below v5e/v6e's 128 MiB.
    return int(min(48 * 1024 * 1024, max(32 * 1024 * 1024, 2 * est)))


def bottleneck_pallas_nhwc(x_nhwc, kparams, tile_h=None):
    """x_nhwc: (N, H, W, Cin). Returns (N, H, W, Cout) in bfloat16."""
    N, H, W, Cin = x_nhwc.shape
    w1, s1, b1, w2, s2, b2, w3, s3, b3 = kparams
    planes = w1.shape[1]
    Cout = w3.shape[1]
    assert Cin == Cout, "identity residual requires inplanes == planes * 4"

    TH = int(_default_tile_h(H) if tile_h is None else tile_h)
    assert H % TH == 0, "tile_h must divide H"
    R = H // TH
    Wp = _PAD_ALIGN + W + 1          # left zero col at _PAD_ALIGN-1, right at _PAD_ALIGN+W

    x = x_nhwc.astype(jnp.bfloat16)

    # Row indices of the 1-row top/bottom halos per row tile, clamped at the
    # image border (the kernel zeroes the border halo rows itself).
    rows = jnp.arange(R, dtype=jnp.int32)
    top_rows = jnp.maximum(rows * TH - 1, 0).astype(jnp.int32)
    bot_rows = jnp.minimum((rows + 1) * TH, H - 1).astype(jnp.int32)

    grid_spec = pltpu.PrefetchScalarGridSpec(
        num_scalar_prefetch=2,
        grid=(N, R),
        in_specs=[
            pl.BlockSpec((1, TH, W, Cin), lambda n, r, tr, br: (n, r, 0, 0)),
            pl.BlockSpec((1, 1, W, Cin), lambda n, r, tr, br: (n, tr[r], 0, 0)),
            pl.BlockSpec((1, 1, W, Cin), lambda n, r, tr, br: (n, br[r], 0, 0)),
            _const_spec(w1), _const_spec(s1), _const_spec(b1),
            _const_spec(w2), _const_spec(s2), _const_spec(b2),
            _const_spec(w3), _const_spec(s3), _const_spec(b3),
        ],
        out_specs=pl.BlockSpec((1, TH, W, Cout), lambda n, r, tr, br: (n, r, 0, 0)),
        scratch_shapes=[pltpu.VMEM((TH + 2, Wp, planes), jnp.bfloat16)],
    )

    return pl.pallas_call(
        _bottleneck_kernel,
        out_shape=jax.ShapeDtypeStruct((N, H, W, Cout), jnp.bfloat16),
        grid_spec=grid_spec,
        compiler_params=pltpu.CompilerParams(
            dimension_semantics=("parallel", "parallel"),
            vmem_limit_bytes=_vmem_limit_bytes(TH, W, Wp, Cin, planes, Cout)),
    )(top_rows, bot_rows, x, x, x, w1, s1, b1, w2, s2, b2, w3, s3, b3)


def bottleneck_pallas(x_nchw, kparams, tile_h=None):
    """PyTorch-interface (NCHW) wrapper. The two transposes each cost an extra
    HBM pass (done in bf16 to halve the bytes); prefer bottleneck_pallas_nhwc
    when the surrounding pipeline is already channels-last."""
    x = jnp.transpose(x_nchw.astype(jnp.bfloat16), (0, 2, 3, 1))
    out = bottleneck_pallas_nhwc(x, kparams, tile_h=tile_h)
    return jnp.transpose(out, (0, 3, 1, 2)).astype(jnp.float32)


# ---------------- deterministic parameter construction (synthetic) ----------

def _make_bn(key, c, eps=1e-5):
    k1, k2, k3, k4 = jax.random.split(key, 4)
    gamma = 1.0 + 0.1 * jax.random.normal(k1, (c,), jnp.float32)
    beta = 0.1 * jax.random.normal(k2, (c,), jnp.float32)
    mean = 0.1 * jax.random.normal(k3, (c,), jnp.float32)
    var = jax.random.uniform(k4, (c,), jnp.float32, minval=0.5, maxval=1.5)
    scale = gamma / jnp.sqrt(var + eps)
    bias = beta - mean * scale
    return scale[None, :], bias[None, :]                         # (1, c) f32


def init_params(key, inplanes, planes, expansion=4):
    """f32 params: conv weights in channels-last layouts + folded BN scale/bias."""
    ks = jax.random.split(key, 6)
    outp = planes * expansion
    w1 = jax.random.normal(ks[0], (inplanes, planes), jnp.float32) * (2.0 / inplanes) ** 0.5
    w2 = jax.random.normal(ks[1], (3, 3, planes, planes), jnp.float32) * (2.0 / (9 * planes)) ** 0.5  # HWIO
    w3 = jax.random.normal(ks[2], (planes, outp), jnp.float32) * (2.0 / planes) ** 0.5
    s1, b1 = _make_bn(ks[3], planes)
    s2, b2 = _make_bn(ks[4], planes)
    s3, b3 = _make_bn(ks[5], outp)
    return (w1, s1, b1, w2, s2, b2, w3, s3, b3)


def prepare_kernel_params(params):
    """Cast conv weights to bf16 and reshape w2 (3,3,planes,planes) HWIO into
    (3, 3*planes, planes) so each ky slice is a (kx, cin)-flattened matmul RHS."""
    w1, s1, b1, w2, s2, b2, w3, s3, b3 = params
    planes = w2.shape[2]
    w2k = w2.astype(jnp.bfloat16).reshape(3, 3 * planes, planes)
    return (w1.astype(jnp.bfloat16), s1, b1, w2k, s2, b2,
            w3.astype(jnp.bfloat16), s3, b3)


# ---------------- plain-JAX reference (mirrors the kernel's precision) -------

def bottleneck_ref(x_nchw, params):
    f32, bf = jnp.float32, jnp.bfloat16
    w1, s1, b1, w2, s2, b2, w3, s3, b3 = params
    x = jnp.transpose(x_nchw, (0, 2, 3, 1)).astype(bf).astype(f32)

    def conv(h, w, pad):
        return lax.conv_general_dilated(
            h, w.astype(bf).astype(f32), window_strides=(1, 1), padding=pad,
            dimension_numbers=("NHWC", "HWIO", "NHWC"))

    h = conv(x, w1[None, None], "VALID")
    h = jnp.maximum(h * s1[0] + b1[0], 0.0).astype(bf).astype(f32)
    h = conv(h, w2, [(1, 1), (1, 1)])
    h = jnp.maximum(h * s2[0] + b2[0], 0.0).astype(bf).astype(f32)
    h = conv(h, w3[None, None], "VALID")
    h = h * s3[0] + b3[0]
    out = jnp.maximum(h + x, 0.0).astype(bf).astype(f32)
    return jnp.transpose(out, (0, 3, 1, 2))


if __name__ == "__main__":
    key = jax.random.PRNGKey(0)
    kx, kp = jax.random.split(key)

    # identity residual requires inplanes == planes * expansion
    inplanes, planes = 16, 4
    N, H, W = 2, 16, 16
    # NOTE: real ResNet stages (planes 64..512, Cin/Cout 256..2048) are
    # lane/MXU aligned; this tiny shape only validates correctness.

    x = jax.random.normal(kx, (N, inplanes, H, W), jnp.float32)   # NCHW like PyTorch
    params = init_params(kp, inplanes, planes)
    kparams = prepare_kernel_params(params)

    out = jax.block_until_ready(bottleneck_pallas(x, kparams))
    ref = jax.block_until_ready(bottleneck_ref(x, params))

    assert out.shape == (N, planes * 4, H, W)
    np.testing.assert_allclose(np.asarray(out), np.asarray(ref),
                               atol=2e-2, rtol=2e-2)
    print("KERNEL_OK")
</pallas_src>

<mosaic_0001>
module attributes {stable_mosaic.version = 11 : i64} {
  func.func @_bottleneck_kernel(%arg0: i32, %arg1: i32, %arg2: memref<2xi32, #tpu.memory_space<smem>>, %arg3: memref<2xi32, #tpu.memory_space<smem>>, %arg4: memref<1x8x16x16xbf16, #tpu.memory_space<vmem>>, %arg5: memref<1x1x16x16xbf16, #tpu.memory_space<vmem>>, %arg6: memref<1x1x16x16xbf16, #tpu.memory_space<vmem>>, %arg7: memref<16x4xbf16, #tpu.memory_space<vmem>>, %arg8: memref<1x4xf32, #tpu.memory_space<vmem>>, %arg9: memref<1x4xf32, #tpu.memory_space<vmem>>, %arg10: memref<3x12x4xbf16, #tpu.memory_space<vmem>>, %arg11: memref<1x4xf32, #tpu.memory_space<vmem>>, %arg12: memref<1x4xf32, #tpu.memory_space<vmem>>, %arg13: memref<4x16xbf16, #tpu.memory_space<vmem>>, %arg14: memref<1x16xf32, #tpu.memory_space<vmem>>, %arg15: memref<1x16xf32, #tpu.memory_space<vmem>>, %arg16: memref<1x8x16x16xbf16, #tpu.memory_space<vmem>>, %arg17: memref<10x33x4xbf16, #tpu.memory_space<vmem>>) attributes {dimension_semantics = [#tpu.dimension_semantics<parallel>, #tpu.dimension_semantics<parallel>], iteration_bounds = array<i64: 2, 2>, scalar_prefetch = 2 : i64, scratch_operands = 1 : i64, tpu.core_type = #tpu.core_type<tc>, window_params = [{transform_indices = @transform_0, window_bounds = array<i64: 1, 8, 16, 16>}, {transform_indices = @transform_1, window_bounds = array<i64: 1, 1, 16, 16>}, {transform_indices = @transform_2, window_bounds = array<i64: 1, 1, 16, 16>}, {pipeline_mode = #tpu.pipeline_mode<synchronous>, transform_indices = @transform_3, window_bounds = array<i64: 16, 4>}, {pipeline_mode = #tpu.pipeline_mode<synchronous>, transform_indices = @transform_4, window_bounds = array<i64: 1, 4>}, {pipeline_mode = #tpu.pipeline_mode<synchronous>, transform_indices = @transform_5, window_bounds = array<i64: 1, 4>}, {pipeline_mode = #tpu.pipeline_mode<synchronous>, transform_indices = @transform_6, window_bounds = array<i64: 3, 12, 4>}, {pipeline_mode = #tpu.pipeline_mode<synchronous>, transform_indices = @transform_7, window_bounds = array<i64: 1, 4>}, {pipeline_mode = #tpu.pipeline_mode<synchronous>, transform_indices = @transform_8, window_bounds = array<i64: 1, 4>}, {pipeline_mode = #tpu.pipeline_mode<synchronous>, transform_indices = @transform_9, window_bounds = array<i64: 4, 16>}, {pipeline_mode = #tpu.pipeline_mode<synchronous>, transform_indices = @transform_10, window_bounds = array<i64: 1, 16>}, {pipeline_mode = #tpu.pipeline_mode<synchronous>, transform_indices = @transform_11, window_bounds = array<i64: 1, 16>}, {transform_indices = @transform_12, window_bounds = array<i64: 1, 8, 16, 16>}]} {
    %c0 = arith.constant 0 : index
    %c0_0 = arith.constant 0 : index
    %0 = vector.load %arg7[%c0, %c0_0] : memref<16x4xbf16, #tpu.memory_space<vmem>>, vector<16x4xbf16>
    %c0_1 = arith.constant 0 : index
    %c0_2 = arith.constant 0 : index
    %1 = vector.load %arg8[%c0_1, %c0_2] : memref<1x4xf32, #tpu.memory_space<vmem>>, vector<1x4xf32>
    %c0_3 = arith.constant 0 : index
    %c0_4 = arith.constant 0 : index
    %2 = vector.load %arg9[%c0_3, %c0_4] : memref<1x4xf32, #tpu.memory_space<vmem>>, vector<1x4xf32>
    %c0_5 = arith.constant 0 : index
    %c0_6 = arith.constant 0 : index
    %c0_7 = arith.constant 0 : index
    %c0_8 = arith.constant 0 : index
    %3 = vector.load %arg4[%c0_5, %c0_6, %c0_7, %c0_8] : memref<1x8x16x16xbf16, #tpu.memory_space<vmem>>, vector<1x8x16x16xbf16>
    %4 = vector.shape_cast %3 : vector<1x8x16x16xbf16> to vector<128x16xbf16>
    %cst = arith.constant dense<0.000000e+00> : vector<128x4xf32>
    %5 = tpu.matmul %4, %0, %cst {dimension_numbers = #tpu.dot_dimension_numbers<[1], [0], [0], [1], [0, 0, 1, 1], [], []>} : vector<128x16xbf16>, vector<16x4xbf16>, vector<128x4xf32> -> vector<128x4xf32>
    %6 = vector.broadcast %1 : vector<1x4xf32> to vector<128x4xf32>
    %7 = arith.mulf %5, %6 : vector<128x4xf32>
    %8 = vector.broadcast %2 : vector<1x4xf32> to vector<128x4xf32>
    %9 = arith.addf %7, %8 : vector<128x4xf32>
    %cst_9 = arith.constant 0.000000e+00 : f32
    %10 = vector.broadcast %cst_9 : f32 to vector<128x4xf32>
    %11 = arith.maximumf %9, %10 : vector<128x4xf32>
    %12 = arith.truncf %11 : vector<128x4xf32> to vector<128x4xbf16>
    %13 = vector.shape_cast %12 : vector<128x4xbf16> to vector<8x16x4xbf16>
    %c1 = arith.constant 1 : index
    %c16 = arith.constant 16 : index
    %c0_10 = arith.constant 0 : index
    %14 = vector.load %arg17[%c1, %c16, %c0_10] : memref<10x33x4xbf16, #tpu.memory_space<vmem>>, vector<8x16x4xbf16>
    tpu.vector_store %arg17[%c1, %c16, %c0_10], %13 {strides = array<i32>} : memref<10x33x4xbf16, #tpu.memory_space<vmem>>, vector<8x16x4xbf16>,
    %c0_11 = arith.constant 0 : index
    %c0_12 = arith.constant 0 : index
    %c0_13 = arith.constant 0 : index
    %c0_14 = arith.constant 0 : index
    %15 = vector.load %arg5[%c0_11, %c0_12, %c0_13, %c0_14] : memref<1x1x16x16xbf16, #tpu.memory_space<vmem>>, vector<1x1x16x16xbf16>
    %16 = vector.shape_cast %15 : vector<1x1x16x16xbf16> to vector<16x16xbf16>
    %c0_15 = arith.constant 0 : index
    %c0_16 = arith.constant 0 : index
    %c0_17 = arith.constant 0 : index
    %c0_18 = arith.constant 0 : index
    %17 = vector.load %arg6[%c0_15, %c0_16, %c0_17, %c0_18] : memref<1x1x16x16xbf16, #tpu.memory_space<vmem>>, vector<1x1x16x16xbf16>
    %18 = vector.shape_cast %17 : vector<1x1x16x16xbf16> to vector<16x16xbf16>
    %19 = tpu.concatenate %16, %18 in 0 : vector<16x16xbf16>, vector<16x16xbf16> -> vector<32x16xbf16>
    %cst_19 = arith.constant dense<0.000000e+00> : vector<32x4xf32>
    %20 = tpu.matmul %19, %0, %cst_19 {dimension_numbers = #tpu.dot_dimension_numbers<[1], [0], [0], [1], [0, 0, 1, 1], [], []>} : vector<32x16xbf16>, vector<16x4xbf16>, vector<32x4xf32> -> vector<32x4xf32>
    %21 = vector.broadcast %1 : vector<1x4xf32> to vector<32x4xf32>
    %22 = arith.mulf %20, %21 : vector<32x4xf32>
    %23 = vector.broadcast %2 : vector<1x4xf32> to vector<32x4xf32>
    %24 = arith.addf %22, %23 : vector<32x4xf32>
    %cst_20 = arith.constant 0.000000e+00 : f32
    %25 = vector.broadcast %cst_20 : f32 to vector<32x4xf32>
    %26 = arith.maximumf %24, %25 : vector<32x4xf32>
    %27 = arith.truncf %26 : vector<32x4xf32> to vector<32x4xbf16>
    %28 = vector.extract_strided_slice %27 {offsets = [0, 0], sizes = [16, 4], strides = [1, 1]} : vector<32x4xbf16> to vector<16x4xbf16>
    %29 = vector.shape_cast %28 : vector<16x4xbf16> to vector<1x16x4xbf16>
    %c0_21 = arith.constant 0 : index
    %c16_22 = arith.constant 16 : index
    %c0_23 = arith.constant 0 : index
    %30 = vector.load %arg17[%c0_21, %c16_22, %c0_23] : memref<10x33x4xbf16, #tpu.memory_space<vmem>>, vector<1x16x4xbf16>
    tpu.vector_store %arg17[%c0_21, %c16_22, %c0_23], %29 {strides = array<i32>} : memref<10x33x4xbf16, #tpu.memory_space<vmem>>, vector<1x16x4xbf16>,
    %31 = vector.extract_strided_slice %27 {offsets = [16, 0], sizes = [16, 4], strides = [1, 1]} : vector<32x4xbf16> to vector<16x4xbf16>
    %32 = vector.shape_cast %31 : vector<16x4xbf16> to vector<1x16x4xbf16>
    %c9 = arith.constant 9 : index
    %c16_24 = arith.constant 16 : index
    %c0_25 = arith.constant 0 : index
    %33 = vector.load %arg17[%c9, %c16_24, %c0_25] : memref<10x33x4xbf16, #tpu.memory_space<vmem>>, vector<1x16x4xbf16>
    tpu.vector_store %arg17[%c9, %c16_24, %c0_25], %32 {strides = array<i32>} : memref<10x33x4xbf16, #tpu.memory_space<vmem>>, vector<1x16x4xbf16>,
    %cst_26 = arith.constant 0.000000e+00 : bf16
    %34 = vector.broadcast %cst_26 : bf16 to vector<10x1x4xbf16>
    %c0_27 = arith.constant 0 : index
    %c15 = arith.constant 15 : index
    %c0_28 = arith.constant 0 : index
    %35 = vector.load %arg17[%c0_27, %c15, %c0_28] : memref<10x33x4xbf16, #tpu.memory_space<vmem>>, vector<10x1x4xbf16>
    tpu.vector_store %arg17[%c0_27, %c15, %c0_28], %34 {strides = array<i32>} : memref<10x33x4xbf16, #tpu.memory_space<vmem>>, vector<10x1x4xbf16>,
    %c0_29 = arith.constant 0 : index
    %c32 = arith.constant 32 : index
    %c0_30 = arith.constant 0 : index
    %36 = vector.load %arg17[%c0_29, %c32, %c0_30] : memref<10x33x4xbf16, #tpu.memory_space<vmem>>, vector<10x1x4xbf16>
    tpu.vector_store %arg17[%c0_29, %c32, %c0_30], %34 {strides = array<i32>} : memref<10x33x4xbf16, #tpu.memory_space<vmem>>, vector<10x1x4xbf16>,
    %c0_i32 = arith.constant 0 : i32
    %37 = arith.cmpi eq, %arg1, %c0_i32 : i32
    %38 = arith.extui %37 : i1 to i32
    %c0_i32_31 = arith.constant 0 : i32
    %39 = arith.cmpi ne, %38, %c0_i32_31 : i32
    scf.if %39 {
      %cst_69 = arith.constant 0.000000e+00 : bf16
      %88 = vector.broadcast %cst_69 : bf16 to vector<1x16x4xbf16>
      %c0_70 = arith.constant 0 : index
      %c16_71 = arith.constant 16 : index
      %c0_72 = arith.constant 0 : index
      %89 = vector.load %arg17[%c0_70, %c16_71, %c0_72] : memref<10x33x4xbf16, #tpu.memory_space<vmem>>, vector<1x16x4xbf16>
      tpu.vector_store %arg17[%c0_70, %c16_71, %c0_72], %88 {strides = array<i32>} : memref<10x33x4xbf16, #tpu.memory_space<vmem>>, vector<1x16x4xbf16>,
    } else {
    }
    %c1_i32 = arith.constant 1 : i32
    %40 = arith.cmpi eq, %arg1, %c1_i32 : i32
    %41 = arith.extui %40 : i1 to i32
    %c0_i32_32 = arith.constant 0 : i32
    %42 = arith.cmpi ne, %41, %c0_i32_32 : i32
    scf.if %42 {
      %cst_69 = arith.constant 0.000000e+00 : bf16
      %88 = vector.broadcast %cst_69 : bf16 to vector<1x16x4xbf16>
      %c9_70 = arith.constant 9 : index
      %c16_71 = arith.constant 16 : index
      %c0_72 = arith.constant 0 : index
      %89 = vector.load %arg17[%c9_70, %c16_71, %c0_72] : memref<10x33x4xbf16, #tpu.memory_space<vmem>>, vector<1x16x4xbf16>
      tpu.vector_store %arg17[%c9_70, %c16_71, %c0_72], %88 {strides = array<i32>} : memref<10x33x4xbf16, #tpu.memory_space<vmem>>, vector<1x16x4xbf16>,
    } else {
    }
    %c0_33 = arith.constant 0 : index
    %c15_34 = arith.constant 15 : index
    %c0_35 = arith.constant 0 : index
    %43 = vector.load %arg17[%c0_33, %c15_34, %c0_35] : memref<10x33x4xbf16, #tpu.memory_space<vmem>>, vector<10x16x4xbf16>
    %c0_36 = arith.constant 0 : index
    %c16_37 = arith.constant 16 : index
    %c0_38 = arith.constant 0 : index
    %44 = vector.load %arg17[%c0_36, %c16_37, %c0_38] : memref<10x33x4xbf16, #tpu.memory_space<vmem>>, vector<10x16x4xbf16>
    %c0_39 = arith.constant 0 : index
    %c17 = arith.constant 17 : index
    %c0_40 = arith.constant 0 : index
    %45 = vector.load %arg17[%c0_39, %c17, %c0_40] : memref<10x33x4xbf16, #tpu.memory_space<vmem>>, vector<10x16x4xbf16>
    %46 = tpu.concatenate %43, %44, %45 in 2 : vector<10x16x4xbf16>, vector<10x16x4xbf16>, vector<10x16x4xbf16> -> vector<10x16x12xbf16>
    %47 = vector.extract_strided_slice %46 {offsets = [0, 0, 0], sizes = [8, 16, 12], strides = [1, 1, 1]} : vector<10x16x12xbf16> to vector<8x16x12xbf16>
    %48 = vector.shape_cast %47 : vector<8x16x12xbf16> to vector<128x12xbf16>
    %c0_41 = arith.constant 0 : index
    %c0_42 = arith.constant 0 : index
    %c0_43 = arith.constant 0 : index
    %49 = vector.load %arg10[%c0_41, %c0_42, %c0_43] : memref<3x12x4xbf16, #tpu.memory_space<vmem>>, vector<1x12x4xbf16>
    %50 = vector.shape_cast %49 : vector<1x12x4xbf16> to vector<12x4xbf16>
    %cst_44 = arith.constant dense<0.000000e+00> : vector<128x4xf32>
    %51 = tpu.matmul %48, %50, %cst_44 {dimension_numbers = #tpu.dot_dimension_numbers<[1], [0], [0], [1], [0, 0, 1, 1], [], []>} : vector<128x12xbf16>, vector<12x4xbf16>, vector<128x4xf32> -> vector<128x4xf32>
    %52 = vector.extract_strided_slice %46 {offsets = [1, 0, 0], sizes = [8, 16, 12], strides = [1, 1, 1]} : vector<10x16x12xbf16> to vector<8x16x12xbf16>
    %53 = vector.shape_cast %52 : vector<8x16x12xbf16> to vector<128x12xbf16>
    %c1_45 = arith.constant 1 : index
    %c0_46 = arith.constant 0 : index
    %c0_47 = arith.constant 0 : index
    %54 = vector.load %arg10[%c1_45, %c0_46, %c0_47] : memref<3x12x4xbf16, #tpu.memory_space<vmem>>, vector<1x12x4xbf16>
    %55 = vector.shape_cast %54 : vector<1x12x4xbf16> to vector<12x4xbf16>
    %cst_48 = arith.constant dense<0.000000e+00> : vector<128x4xf32>
    %56 = tpu.matmul %53, %55, %cst_48 {dimension_numbers = #tpu.dot_dimension_numbers<[1], [0], [0], [1], [0, 0, 1, 1], [], []>} : vector<128x12xbf16>, vector<12x4xbf16>, vector<128x4xf32> -> vector<128x4xf32>
    %57 = arith.addf %51, %56 : vector<128x4xf32>
    %58 = vector.extract_strided_slice %46 {offsets = [2, 0, 0], sizes = [8, 16, 12], strides = [1, 1, 1]} : vector<10x16x12xbf16> to vector<8x16x12xbf16>
    %59 = vector.shape_cast %58 : vector<8x16x12xbf16> to vector<128x12xbf16>
    %c2 = arith.constant 2 : index
    %c0_49 = arith.constant 0 : index
    %c0_50 = arith.constant 0 : index
    %60 = vector.load %arg10[%c2, %c0_49, %c0_50] : memref<3x12x4xbf16, #tpu.memory_space<vmem>>, vector<1x12x4xbf16>
    %61 = vector.shape_cast %60 : vector<1x12x4xbf16> to vector<12x4xbf16>
    %cst_51 = arith.constant dense<0.000000e+00> : vector<128x4xf32>
    %62 = tpu.matmul %59, %61, %cst_51 {dimension_numbers = #tpu.dot_dimension_numbers<[1], [0], [0], [1], [0, 0, 1, 1], [], []>} : vector<128x12xbf16>, vector<12x4xbf16>, vector<128x4xf32> -> vector<128x4xf32>
    %63 = arith.addf %57, %62 : vector<128x4xf32>
    %c0_52 = arith.constant 0 : index
    %c0_53 = arith.constant 0 : index
    %64 = vector.load %arg11[%c0_52, %c0_53] : memref<1x4xf32, #tpu.memory_space<vmem>>, vector<1x4xf32>
    %65 = vector.broadcast %64 : vector<1x4xf32> to vector<128x4xf32>
    %66 = arith.mulf %63, %65 : vector<128x4xf32>
    %c0_54 = arith.constant 0 : index
    %c0_55 = arith.constant 0 : index
    %67 = vector.load %arg12[%c0_54, %c0_55] : memref<1x4xf32, #tpu.memory_space<vmem>>, vector<1x4xf32>
    %68 = vector.broadcast %67 : vector<1x4xf32> to vector<128x4xf32>
    %69 = arith.addf %66, %68 : vector<128x4xf32>
    %cst_56 = arith.constant 0.000000e+00 : f32
    %70 = vector.broadcast %cst_56 : f32 to vector<128x4xf32>
    %71 = arith.maximumf %69, %70 : vector<128x4xf32>
    %72 = arith.truncf %71 : vector<128x4xf32> to vector<128x4xbf16>
    %c0_57 = arith.constant 0 : index
    %c0_58 = arith.constant 0 : index
    %73 = vector.load %arg13[%c0_57, %c0_58] : memref<4x16xbf16, #tpu.memory_space<vmem>>, vector<4x16xbf16>
    %cst_59 = arith.constant dense<0.000000e+00> : vector<128x16xf32>
    %74 = tpu.matmul %72, %73, %cst_59 {dimension_numbers = #tpu.dot_dimension_numbers<[1], [0], [0], [1], [0, 0, 1, 1], [], []>} : vector<128x4xbf16>, vector<4x16xbf16>, vector<128x16xf32> -> vector<128x16xf32>
    %c0_60 = arith.constant 0 : index
    %c0_61 = arith.constant 0 : index
    %75 = vector.load %arg14[%c0_60, %c0_61] : memref<1x16xf32, #tpu.memory_space<vmem>>, vector<1x16xf32>
    %76 = vector.broadcast %75 : vector<1x16xf32> to vector<128x16xf32>
    %77 = arith.mulf %74, %76 : vector<128x16xf32>
    %c0_62 = arith.constant 0 : index
    %c0_63 = arith.constant 0 : index
    %78 = vector.load %arg15[%c0_62, %c0_63] : memref<1x16xf32, #tpu.memory_space<vmem>>, vector<1x16xf32>
    %79 = vector.broadcast %78 : vector<1x16xf32> to vector<128x16xf32>
    %80 = arith.addf %77, %79 : vector<128x16xf32>
    %81 = arith.extf %4 : vector<128x16xbf16> to vector<128x16xf32>
    %82 = arith.addf %80, %81 : vector<128x16xf32>
    %cst_64 = arith.constant 0.000000e+00 : f32
    %83 = vector.broadcast %cst_64 : f32 to vector<128x16xf32>
    %84 = arith.maximumf %82, %83 : vector<128x16xf32>
    %85 = vector.shape_cast %84 : vector<128x16xf32> to vector<1x8x16x16xf32>
    %86 = arith.truncf %85 : vector<1x8x16x16xf32> to vector<1x8x16x16xbf16>
    %c0_65 = arith.constant 0 : index
    %c0_66 = arith.constant 0 : index
    %c0_67 = arith.constant 0 : index
    %c0_68 = arith.constant 0 : index
    %87 = vector.load %arg16[%c0_65, %c0_66, %c0_67, %c0_68] : memref<1x8x16x16xbf16, #tpu.memory_space<vmem>>, vector<1x8x16x16xbf16>
    tpu.vector_store %arg16[%c0_65, %c0_66, %c0_67, %c0_68], %86 {strides = array<i32>} : memref<1x8x16x16xbf16, #tpu.memory_space<vmem>>, vector<1x8x16x16xbf16>,
    return
  }
  func.func @transform_0(%arg0: i32, %arg1: i32, %arg2: memref<2xi32, #tpu.memory_space<smem>>, %arg3: memref<2xi32, #tpu.memory_space<smem>>) -> (i32, i32, i32, i32) {
    %c0_i32 = arith.constant 0 : i32
    %c0_i32_0 = arith.constant 0 : i32
    %c0_i32_1 = arith.constant 0 : i32
    return %arg0, %arg1, %c0_i32, %c0_i32_0 : i32, i32, i32, i32
  }
  func.func @transform_1(%arg0: i32, %arg1: i32, %arg2: memref<2xi32, #tpu.memory_space<smem>>, %arg3: memref<2xi32, #tpu.memory_space<smem>>) -> (i32, i32, i32, i32) {
    %0 = arith.index_cast %arg1 : i32 to index
    %1 = memref.load %arg2[%0] : memref<2xi32, #tpu.memory_space<smem>>
    %c0_i32 = arith.constant 0 : i32
    %c0_i32_0 = arith.constant 0 : i32
    %c0_i32_1 = arith.constant 0 : i32
    return %arg0, %1, %c0_i32, %c0_i32_0 : i32, i32, i32, i32
  }
  func.func @transform_2(%arg0: i32, %arg1: i32, %arg2: memref<2xi32, #tpu.memory_space<smem>>, %arg3: memref<2xi32, #tpu.memory_space<smem>>) -> (i32, i32, i32, i32) {
    %0 = arith.index_cast %arg1 : i32 to index
    %1 = memref.load %arg3[%0] : memref<2xi32, #tpu.memory_space<smem>>
    %c0_i32 = arith.constant 0 : i32
    %c0_i32_0 = arith.constant 0 : i32
    %c0_i32_1 = arith.constant 0 : i32
    return %arg0, %1, %c0_i32, %c0_i32_0 : i32, i32, i32, i32
  }
  func.func @transform_3(%arg0: i32, %arg1: i32, %arg2: memref<2xi32, #tpu.memory_space<smem>>, %arg3: memref<2xi32, #tpu.memory_space<smem>>) -> (i32, i32) {
    %c0_i32 = arith.constant 0 : i32
    %c0_i32_0 = arith.constant 0 : i32
    %c0_i32_1 = arith.constant 0 : i32
    return %c0_i32, %c0_i32_0 : i32, i32
  }
  func.func @transform_4(%arg0: i32, %arg1: i32, %arg2: memref<2xi32, #tpu.memory_space<smem>>, %arg3: memref<2xi32, #tpu.memory_space<smem>>) -> (i32, i32) {
    %c0_i32 = arith.constant 0 : i32
    %c0_i32_0 = arith.constant 0 : i32
    %c0_i32_1 = arith.constant 0 : i32
    return %c0_i32, %c0_i32_0 : i32, i32
  }
  func.func @transform_5(%arg0: i32, %arg1: i32, %arg2: memref<2xi32, #tpu.memory_space<smem>>, %arg3: memref<2xi32, #tpu.memory_space<smem>>) -> (i32, i32) {
    %c0_i32 = arith.constant 0 : i32
    %c0_i32_0 = arith.constant 0 : i32
    %c0_i32_1 = arith.constant 0 : i32
    return %c0_i32, %c0_i32_0 : i32, i32
  }
  func.func @transform_6(%arg0: i32, %arg1: i32, %arg2: memref<2xi32, #tpu.memory_space<smem>>, %arg3: memref<2xi32, #tpu.memory_space<smem>>) -> (i32, i32, i32) {
    %c0_i32 = arith.constant 0 : i32
    %c0_i32_0 = arith.constant 0 : i32
    %c0_i32_1 = arith.constant 0 : i32
    %c0_i32_2 = arith.constant 0 : i32
    return %c0_i32, %c0_i32_0, %c0_i32_1 : i32, i32, i32
  }
  func.func @transform_7(%arg0: i32, %arg1: i32, %arg2: memref<2xi32, #tpu.memory_space<smem>>, %arg3: memref<2xi32, #tpu.memory_space<smem>>) -> (i32, i32) {
    %c0_i32 = arith.constant 0 : i32
    %c0_i32_0 = arith.constant 0 : i32
    %c0_i32_1 = arith.constant 0 : i32
    return %c0_i32, %c0_i32_0 : i32, i32
  }
  func.func @transform_8(%arg0: i32, %arg1: i32, %arg2: memref<2xi32, #tpu.memory_space<smem>>, %arg3: memref<2xi32, #tpu.memory_space<smem>>) -> (i32, i32) {
    %c0_i32 = arith.constant 0 : i32
    %c0_i32_0 = arith.constant 0 : i32
    %c0_i32_1 = arith.constant 0 : i32
    return %c0_i32, %c0_i32_0 : i32, i32
  }
  func.func @transform_9(%arg0: i32, %arg1: i32, %arg2: memref<2xi32, #tpu.memory_space<smem>>, %arg3: memref<2xi32, #tpu.memory_space<smem>>) -> (i32, i32) {
    %c0_i32 = arith.constant 0 : i32
    %c0_i32_0 = arith.constant 0 : i32
    %c0_i32_1 = arith.constant 0 : i32
    return %c0_i32, %c0_i32_0 : i32, i32
  }
  func.func @transform_10(%arg0: i32, %arg1: i32, %arg2: memref<2xi32, #tpu.memory_space<smem>>, %arg3: memref<2xi32, #tpu.memory_space<smem>>) -> (i32, i32) {
    %c0_i32 = arith.constant 0 : i32
    %c0_i32_0 = arith.constant 0 : i32
    %c0_i32_1 = arith.constant 0 : i32
    return %c0_i32, %c0_i32_0 : i32, i32
  }
  func.func @transform_11(%arg0: i32, %arg1: i32, %arg2: memref<2xi32, #tpu.memory_space<smem>>, %arg3: memref<2xi32, #tpu.memory_space<smem>>) -> (i32, i32) {
    %c0_i32 = arith.constant 0 : i32
    %c0_i32_0 = arith.constant 0 : i32
    %c0_i32_1 = arith.constant 0 : i32
    return %c0_i32, %c0_i32_0 : i32, i32
  }
  func.func @transform_12(%arg0: i32, %arg1: i32, %arg2: memref<2xi32, #tpu.memory_space<smem>>, %arg3: memref<2xi32, #tpu.memory_space<smem>>) -> (i32, i32, i32, i32) {
    %c0_i32 = arith.constant 0 : i32
    %c0_i32_0 = arith.constant 0 : i32
    %c0_i32_1 = arith.constant 0 : i32
    return %arg0, %arg1, %c0_i32, %c0_i32_0 : i32, i32, i32, i32
  }
}

</mosaic_0001>

<bundles_post_ra>
// kernel: tpu_custom_call.1
= control target key start
LH: loop header
LB: loop body
LE: loop exit
PB: predicated region body
PF: predicated region fallthrough
CT: control target
= control target key end

     0   :  { %s4542_s0 = inlined_call_operand.vmem [shape: s32[2], index: 0, kind: input, shape index: {}]   ;;  %s4543_s2 = inlined_call_operand.hbm [shape: bf16[2,16,16,16], index: 2, kind: input, shape index: {}]   ;;  %s4544_s3 = inlined_call_operand.hbm [shape: bf16[2,16,16,16], index: 3, kind: input, shape index: {}]   ;;  %s4545_s4 = inlined_call_operand.hbm [shape: bf16[2,16,16,16], index: 4, kind: input, shape index: {}]   ;;  %s4546_s5 = inlined_call_operand.vmem [shape: bf16[16,4], index: 5, kind: input, shape index: {}]   ;;  %s4547_s6 = inlined_call_operand.vmem [shape: f32[1,4], index: 6, kind: input, shape index: {}]   ;;  %s4548_s7 = inlined_call_operand.vmem [shape: f32[1,4], index: 7, kind: input, shape index: {}]   ;;  %s4549_s8 = inlined_call_operand.vmem [shape: bf16[3,12,4], index: 8, kind: input, shape index: {}]   ;;  %s4550_s9 = inlined_call_operand.vmem [shape: f32[1,4], index: 9, kind: input, shape index: {}]   ;;  %s4551_s10 = inlined_call_operand.vmem [shape: f32[1,4], index: 10, kind: input, shape index: {}]   ;;  %s4552_s11 = inlined_call_operand.vmem [shape: bf16[4,16], index: 11, kind: input, shape index: {}]   ;;  %s4553_s12 = inlined_call_operand.vmem [shape: f32[1,16], index: 12, kind: input, shape index: {}]   ;;  %s4554_s13 = inlined_call_operand.vmem [shape: f32[1,16], index: 13, kind: input, shape index: {}]   ;;  %s4555_s14 = inlined_call_operand.hbm [shape: bf16[2,16,16,16], index: 14, kind: output, shape index: {}]   ;;  %s4556_s1 = inlined_call_operand.vmem [shape: s32[2], index: 1, kind: input, shape index: {}]  }
   0x1   :  { %4579 = sst [smem:[#allocation34_spill]] %s4543_s2  ;;  %s19_s15 = sshll.u32 %s4542_s0, 4  ;;  %s20_s15 = int_to_ptr.vmem [resolvable:$true] %s19_s15 }
   0x2   :  { %4580 = sst [smem:[#allocation35_spill]] %s4544_s3  ;;  %s23_s18 = sshll.u32 %s4556_s1, 4  ;;  %s24_s18 = int_to_ptr.vmem [resolvable:$true] %s23_s18 }
   0x3   :  { %4581 = sst [smem:[#allocation36_spill]] %s4546_s5  ;;  %s3150_s19 = scalar_lea.vmem %s20_s15, 16 }
   0x4   :  { %4582 = sst [smem:[#allocation37_spill]] %s4547_s6  ;;  %p3151_p0 = scmp.ne.s32.totalorder %s20_s15, %s3150_s19 }
   0x5   :  { %4583 = sst [smem:[#allocation38_spill]] %s4548_s7  ;;  %p3155_p1 = scmp.lt.s32.totalorder %s20_s15, %s20_s15 }
   0x6   :  { %4584 = sst [smem:[#allocation39_spill]] %s4549_s8  ;;  %p3156_p2 = scmp.lt.s32.totalorder %s3150_s19, %s3150_s19 }
   0x7   :  { %4585 = sst [smem:[#allocation40_spill]] %s4550_s9 }
   0x8   :  { %4586 = sst [smem:[#allocation41_spill]] %s4551_s10  ;;  %p3157_p3 = por %p3156_p2, %p3155_p1 }
   0x9   :  { %4587 = sst [smem:[#allocation42_spill]] %s4552_s11 }
   0xa   :  { %4588 = sst [smem:[#allocation43_spill]] %s4553_s12  ;;  %p3158_p4 = pnand %p3157_p3, %p3151_p0 }
   0xb   :  { %4589 = sst [smem:[#allocation44_spill]] %s4554_s13 }
   0xc   :  { %4590 = sst [smem:[#allocation45_spill]] %s4555_s14 }
   0xd   :  { %3161 = shalt.err (!%p3158_p4)  }
   0xe   :  { %s3422_s20 = smov [#allocation4]   ;;  %s3162_s21 = scalar_lea.vmem %s24_s18, 16 }
   0xf   :  { %22 = dma.vmem_to_smem %s20_s15, 16, %s3422_s20, [#allocation3] }
  0x10   :  { %p3163_p5 = scmp.ne.s32.totalorder %s24_s18, %s3162_s21  ;;  %p3167_p6 = scmp.lt.s32.totalorder %s24_s18, %s24_s18 }
  0x11   :  { %p3168_p7 = scmp.lt.s32.totalorder %s3162_s21, %s3162_s21 }
  0x13   :  { %p3169_p8 = por %p3168_p7, %p3167_p6 }
  0x15   :  { %p3170_p9 = pnand %p3169_p8, %p3163_p5 }
  0x17   :  { %3173 = shalt.err (!%p3170_p9)  }
  0x18   :  { %s3423_s0 = smov [#allocation5]  }
  0x19   :  { %26 = dma.vmem_to_smem %s24_s18, 16, %s3423_s0, [#allocation3] }
  0x1a   :  { %3348 = dma.done.wait [#allocation3], 32 }
  0x1b   :  { %3349 = vsyncadd [#allocation3], 4294967264 }
  0x1c   :  { %28 = sfence }
  0x1d   :  { %29 = vsyncpa [#allocation7], 0 }
  0x1e   :  { %31 = vsyncpa [#allocation7 + $0x1], 0 }
  0x1f   :  { %32 = vsyncpa [#allocation10], 0 }
  0x20   :  { %34 = vsyncpa [#allocation10 + $0x1], 0 }
  0x21   :  { %35 = vsyncpa [#allocation8], 0 }
  0x22   :  { %37 = vsyncpa [#allocation8 + $0x1], 0  ;;  %s3516_s1 = smov 0   ;;  %s3518_s22 = smov 0  }
  0x23   :  { %s3520_s23 = smov 0   ;;  %s3522_s24 = smov 0  }
  0x24   :  { %s3524_s25 = smov 0   ;;  %s3526_s26 = smov 0  }
  0x25   :  { %s3528_s27 = smov 0   ;;  %s3530_s28 = smov 0  }
  0x26   :  { %s3532_s29 = smov 0   ;;  %s3534_s30 = smov 0  }
  0x27   :  { %s3536_s15 = smov 0   ;;  %s3538_s16 = smov 0  }
  0x28   :  { %s3540_s17 = smov 0   ;;  %s3542_s18 = smov 0  }
  0x29 LB: > { %4591 = sst [smem:[#allocation22_spill]] %s3384_s25  ;;  %s3587_s19 = sadd.s32 4294967295, %s3420_s18   ;;  %s3420_s18 = sphi %s3542_s18, %s43_s18   ;;  %s3416_s17 = sphi %s3540_s17, %s4664_s17   ;;  %s3412_s16 = sphi %s3538_s16, %s4670_s16   ;;  %s3408_s15 = sphi %s3536_s15, %s4662_s15   ;;  %s3404_s30 = sphi %s3534_s30, %s4661_s30   ;;  %s3400_s29 = sphi %s3532_s29, %s4660_s29   ;;  %s3396_s28 = sphi %s3530_s28, %s4669_s28   ;;  %s3392_s27 = sphi %s3528_s27, %s4668_s27   ;;  %s3388_s26 = sphi %s3526_s26, %s4658_s26   ;;  %s3384_s25 = sphi %s3524_s25, %s4657_s25   ;;  %s3380_s24 = sphi %s3522_s24, %s4656_s24   ;;  %s3376_s23 = sphi %s3520_s23, %s4667_s23   ;;  %s3372_s22 = sphi %s3518_s22, %s4666_s22   ;;  %s3368_s1 = sphi %s3516_s1, %s4665_s1  }
  0x2a   : > { %4592 = sst [smem:[#allocation23_spill]] %s3388_s26  ;;  %s52_s20 = sadd.s32 1, %s3412_s16 }
  0x2b   : > { %4593 = sst [smem:[#allocation24_spill]] %s3400_s29  ;;  %p53_p10 = scmp.ge.s32.totalorder %s52_s20, 2 }
  0x2c   : > { %4594 = sst [smem:[#allocation25_spill]] %s3404_s30  ;;  %s55_s21 = sadd.s32 1, %s3416_s17 }
  0x2d   : > { %4595 = sst [smem:[#allocation26_spill]] %s3408_s15  ;;  %p4566_p11 = scmp.eq.s32.totalorder %s3420_s18, 0 }
  0x2e   : > { %4596 = sst [smem:[#allocation27_spill]] %s3412_s16  ;;  %p4565_p12 = scmp.eq.s32.totalorder %s3587_s19, 0 }
  0x2f   : > { %4597 = sst [smem:[#allocation28_spill]] %s3416_s17  ;;  %s4672_s20 = smov (%p53_p10, %s52_s20), 0 }
  0x30   : > { %4598 = sst [smem:[#allocation29_spill]] %s4672_s20  ;;  %s4674_s21 = smov (!%p53_p10, %s55_s21), %s3416_s17 }
  0x31   : > { %s60_s0 = ssub.s32 %s3412_s16, %s4672_s20  ;;  %s87_s14 = sld [smem:[#allocation4 + %s3412_s16]] }
  0x32   : > { %p57_p13 = scmp.ge.s32.totalorder %s4674_s21, 2  ;;  %s88_s15 = sld [smem:[#allocation4 + %s4672_s20]] }
  0x33   : > { %s94_s13 = sadd.s32 1, %s3388_s26  ;;  %p101_p0 = scmp.ne.s32.totalorder %s3388_s26, %s3384_s25 }
  0x34   : > { %s4676_s21 = smov (%p57_p13, %s4674_s21), 0  ;;  %p107_p2 = scmp.ne.s32.totalorder %s3384_s25, %s3380_s24 }
  0x35   : > { %4599 = sst [smem:[#allocation30_spill]] %s4676_s21  ;;  %p3607_p1 = por %p101_p0, %p4566_p11 }
  0x36   : > { %s59_s10 = ssub.s32 %s3416_s17, %s4676_s21  ;;  %s117_s9 = sld [smem:[#allocation5 + %s3412_s16]] }
  0x37   : > { %s3616_s11 = sor.u32 %s60_s0, %s59_s10  ;;  %p3620_p3 = por %p107_p2, %p4565_p12 }
  0x38   : > { %s90_s30 = ssub.s32 %s87_s14, %s88_s15  ;;  %s118_s6 = sld [smem:[#allocation5 + %s4672_s20]] }
  0x39   : > { %s4601_s8 = scalar_select %p3620_p3, 1, 0 }
  0x3a   : > { %s91_s7 = sor.u32 %s90_s30, %s59_s10  ;;  %p4564_p6 = scmp.lt.s32.totalorder %s3420_s18, 4 }
  0x3b   : > { %4602 = sst [smem:[#allocation31_spill]] %s4601_s8  ;;  %p92_p5 = scmp.eq.s32.totalorder %s91_s7, 0 }
  0x3c   : > { %s3628_s24 = sshll.u32 %s3416_s17, 5  ;;  %s429_s21 = sand.u32 1, %s3420_s18  }
  0x3d   : > { %s3631_s0 = scalar_select %p92_p5, %s3388_s26, %s94_s13  }
  0x3e   : > { %s431_s5 = sand.u32 1, %s3388_s26   ;;  %s120_s8 = ssub.s32 %s117_s9, %s118_s6 }
  0x3f   : > { %4603 = sst [smem:[#allocation32_spill]] %s3631_s0  ;;  %s3635_s25 = sor.u32 %s120_s8, %s59_s10 }
  0x40   : > { %s2550_s14 = sshll.u32 %s431_s5, 3  ;;  %p3651_p8 = pnand %p4564_p6, %p3607_p1 }
  0x41   : > { %s2936_s7 = scalar_select %p3607_p1, [#allocation4], [#allocation13] }
  0x42   : > { %s2937_s30 = scalar_select %p3607_p1, %s3412_s16, 0 }
  0x43   : > { %s4678_s7 = smov (!%p4564_p6, %s2936_s7), [#allocation15]  ;;  %s433_s13 = scalar_lea.vmem [#allocation9], %s2550_s14 }
  0x44   : > { %s4680_s30 = smov (!%p4564_p6, %s2937_s30), 0  ;;  %s443_s15 = sshll.u32 %s433_s13, 4  ;;  %s3655_s15 = int_to_ptr.vmem [resolvable:$true] %s443_s15 }
  0x45   : > { %s434_s5 = sld [smem:[%s4678_s7 + %s4680_s30]]  ;;  %p2558_p9 = scmp.ge.s32.totalorder %s3420_s18, 1 }
  0x46   : > { %p475_p10 = scmp.lt.s32.totalorder %s3420_s18, 5  ;;  %s4606_s3 = sld [smem:[#allocation35_spill]] }
  0x47   : > { %s3669_s7 = scalar_lea.sflag [#allocation10], %s429_s21  ;;  %p3176_p1 = pneg %p3651_p8 }
  0x48   : > { %p3659_p13 = pnand %p2558_p9, %p475_p10 }
  0x4b   : > { %s2551_s9 = sshll.u32 %s434_s5, 1 }
  0x4c   : > { %s440_s10 = sadd.s32 %s2551_s9, %s3628_s24 }
  0x4d   : > { %s2553_s14 = sshll.u32 %s440_s10, 6  ;;  %s3179_s10 = scalar_lea.hbm %s4606_s3, 4096 }
  0x4e   : > { %s3667_s20 = scalar_lea.hbm %s4606_s3, %s2553_s14 }
  0x4f   : > { %s3174_s30 = scalar_lea.hbm %s3667_s20, 128  ;;  %p3180_p9 = scmp.lt.u32.totalorder %s3667_s20, %s4606_s3 }
  0x50   : > { %p3175_p0 = scmp.ne.s32.totalorder %s3667_s20, %s3174_s30  ;;  %p3181_p10 = scmp.lt.u32.totalorder %s3179_s10, %s3174_s30 }
  0x51   : > { %p3183_p6 = scmp.lt.u32.totalorder %s3174_s30, %s3667_s20 }
  0x52   : > { %p3177_p2 = pnand %p3176_p1, %p3175_p0  ;;  %p3182_p7 = por %p3181_p10, %p3180_p9 }
  0x54   : > { %p3178_p5 = pneg %p3177_p2  ;;  %p3184_p12 = por %p3183_p6, %p3182_p7 }
  0x56   : > { %p3185_p11 = pnand %p3184_p12, %p3178_p5 }
  0x58   : > { %3188 = shalt.err (!%p3185_p11)
}
  0x59   : > { %s3189_s21 = scalar_lea.vmem %s3655_s15, 128  ;;  %s3424_s13 = smov [#allocation9]  }
  0x5a   : > { %p3190_p0 = scmp.ne.s32.totalorder %s3655_s15, %s3189_s21  ;;  %s3194_s5 = sshll.u32 %s3424_s13, 4  ;;  %s3195_s5 = int_to_ptr.vmem [resolvable:$false] %s3194_s5 }
  0x5b   : > { %s3196_s9 = scalar_lea.vmem %s3195_s5, 256  ;;  %p3197_p3 = scmp.lt.s32.totalorder %s3655_s15, %s3195_s5 }
  0x5c   : > { %p3192_p2 = pnand %p3190_p0, %p3176_p1  ;;  %p3198_p9 = scmp.lt.s32.totalorder %s3196_s9, %s3189_s21 }
  0x5e   : > { %p3193_p4 = pneg %p3192_p2  ;;  %p3199_p10 = por %p3198_p9, %p3197_p3 }
  0x60   : > { %p3200_p6 = pnand %p3199_p10, %p3193_p4 }
  0x62   : > { %3203 = shalt.err (!%p3200_p6)
}
  0x63   : > { %s4568_s30 = smov 64   ;;  %s4570_s10 = smov 4  }
  0x64   : > { %2955 = dma.hbm_to_vmem [thread:$0]  (!%p3651_p8), %s3667_s20, 128, %s3655_s15, %s3669_s7, %s4568_s30, %s4568_s30, %s4570_s10  }
  0x65   : > { %s2542_s14 = sadd.s32 4294967294, %s3420_s18   ;;  %s64_s12 = sadd.s32 1, %s3400_s29 }
  0x66   : > { %p4607_p11 = scmp.eq.s32.totalorder %s3616_s11, 0  ;;  %p71_p12 = scmp.ne.s32.totalorder %s3400_s29, %s3396_s28 }
  0x67   : > { %p77_p3 = scmp.ne.s32.totalorder %s3396_s28, %s3392_s27  ;;  %p352_p4 = scmp.eq.s32.totalorder %s3587_s19, 3 }
  0x68   : > { %s3705_s21 = scalar_select %p4607_p11, %s3400_s29, %s64_s12  }
  0x69   : > { %p358_p7 = scmp.eq.s32.totalorder %s2542_s14, 3  ;;  %p4609_p1 = scmp.eq.s32.totalorder %s3420_s18, 0 }
  0x6a   : > { %4608 = sst [smem:[#allocation33_spill]] %s3705_s21  ;;  %p4611_p0 = scmp.eq.s32.totalorder %s3587_s19, 0 }
  0x6b   : > { %p3714_p5 = por %p4609_p1, %p71_p12  ;;  %p3724_p8 = por %p352_p4, %p71_p12 }
  0x6c   : > { %p3720_p2 = por %p4611_p0, %p77_p3  ;;  %p3728_p9 = por %p358_p7, %p77_p3 }
  0x6d   : > { %s4613_s11 = scalar_select %p3724_p8, 1, 0 }
  0x6e   : > { %s4612_s6 = scalar_select %p3720_p2, 1, 0 }
  0x6f   : > { %s4614_s20 = scalar_select %p3728_p9, 1, 0 }
  0x70   : > { %s405_s15 = sand.u32 1, %s3400_s29   ;;  %s2714_s5 = sshll.u32 %s3412_s16, 4 }
  0x71   : > { %s2545_s9 = sshll.u32 %s405_s15, 6  ;;  %s416_s14 = sadd.s32 %s2714_s5, %s3628_s24 }
  0x72   : > { %s2549_s12 = sshll.u32 %s416_s14, 6  ;;  %s409_s30 = scalar_lea.vmem [#allocation6], %s2545_s9 }
  0x73   : > { %s419_s10 = sshll.u32 %s409_s30, 4  ;;  %s4615_s2 = sld [smem:[#allocation34_spill]]  ;;  %s3740_s10 = int_to_ptr.vmem [resolvable:$true] %s419_s10 }
  0x74   : > { %p4616_p10 = scmp.lt.s32.totalorder %s3420_s18, 4  ;;  %s3750_s30 = scalar_lea.sflag [#allocation7], %s405_s15 }
  0x76   : > { %p3746_p6 = pnand %p4616_p10, %p3714_p5 }
  0x78   : > { %p3206_p12 = pneg %p3746_p6 }
  0x79   : > { %s3738_s21 = scalar_lea.hbm %s4615_s2, %s2549_s12  ;;  %s3209_s13 = scalar_lea.hbm %s4615_s2, 4096 }
  0x7a   : > { %s3204_s5 = scalar_lea.hbm %s3738_s21, 1024  ;;  %p3210_p7 = scmp.lt.u32.totalorder %s3738_s21, %s4615_s2 }
  0x7b   : > { %p3205_p11 = scmp.ne.s32.totalorder %s3738_s21, %s3204_s5  ;;  %p3211_p1 = scmp.lt.u32.totalorder %s3209_s13, %s3204_s5 }
  0x7c   : > { %p3213_p0 = scmp.lt.u32.totalorder %s3204_s5, %s3738_s21 }
  0x7d   : > { %p3207_p3 = pnand %p3206_p12, %p3205_p11  ;;  %p3212_p5 = por %p3211_p1, %p3210_p7 }
  0x7f   : > { %p3208_p4 = pneg %p3207_p3  ;;  %p3214_p10 = por %p3213_p0, %p3212_p5 }
  0x81   : > { %p3215_p9 = pnand %p3214_p10, %p3208_p4 }
  0x83   : > { %3218 = shalt.err (!%p3215_p9)
}
  0x84   : > { %s3219_s15 = scalar_lea.vmem %s3740_s10, 1024  ;;  %s3427_s12 = smov [#allocation6]  }
  0x85   : > { %p3220_p11 = scmp.ne.s32.totalorder %s3740_s10, %s3219_s15  ;;  %s3224_s3 = sshll.u32 %s3427_s12, 4  ;;  %s3225_s3 = int_to_ptr.vmem [resolvable:$false] %s3224_s3 }
  0x86   : > { %s3226_s17 = scalar_lea.vmem %s3225_s3, 2048  ;;  %p3227_p2 = scmp.lt.s32.totalorder %s3740_s10, %s3225_s3 }
  0x87   : > { %p3222_p3 = pnand %p3220_p11, %p3206_p12  ;;  %p3228_p7 = scmp.lt.s32.totalorder %s3226_s17, %s3219_s15 }
  0x89   : > { %p3223_p8 = pneg %p3222_p3  ;;  %p3229_p1 = por %p3228_p7, %p3227_p2 }
  0x8b   : > { %p3230_p5 = pnand %p3229_p1, %p3223_p8 }
  0x8d   : > { %3233 = shalt.err (!%p3230_p5)
}
  0x8e   : > { %s4618_s5 = smov 4   ;;  %s4619_s13 = smov 64  }
  0x8f   : > { %2950 = dma.hbm_to_vmem [thread:$0]  (!%p3746_p6), %s3738_s21, 1024, %s3740_s10, %s3750_s30, %s4619_s13, %s4619_s13, %s4618_s5  }
  0x90   : > { %s124_s29 = sadd.s32 1, %s3376_s23  ;;  %p131_p2 = scmp.ne.s32.totalorder %s3376_s23, %s3372_s22 }
  0x91   : > { %p4620_p8 = scmp.eq.s32.totalorder %s3635_s25, 0  ;;  %p4621_p9 = scmp.eq.s32.totalorder %s3420_s18, 0 }
  0x92   : > { %p137_p4 = scmp.ne.s32.totalorder %s3372_s22, %s3368_s1  ;;  %s455_s14 = sand.u32 1, %s3376_s23  }
  0x93   : > { %s3787_s9 = scalar_select %p4620_p8, %s3376_s23, %s124_s29  }
  0x94   : > { %p133_p12 = por %p131_p2, %p4621_p9  ;;  %p4622_p0 = scmp.eq.s32.totalorder %s3587_s19, 0 }
  0x95   : > { %s2554_s12 = sshll.u32 %s455_s14, 3  ;;  %p4624_p11 = scmp.lt.s32.totalorder %s3420_s18, 4 }
  0x96   : > { %p3796_p10 = por %p137_p4, %p4622_p0  ;;  %s457_s21 = scalar_lea.vmem [#allocation11], %s2554_s12 }
  0x97   : > { %p3802_p3 = pnand %p4624_p11, %p133_p12  ;;  %p4626_p6 = pmov %p4624_p11 }
  0x98   : > { %s4623_s15 = scalar_select %p3796_p10, 1, 0 }
  0x99   : > { %s2939_s25 = scalar_select %p133_p12, [#allocation5], [#allocation14] }
  0x9a   : > { %s2940_s10 = scalar_select %p133_p12, %s3412_s16, 0 }
  0x9b   : > { %s4682_s25 = smov (!%p4626_p6, %s2939_s25), [#allocation16]  ;;  %p4627_p7 = pmov %p4626_p6 }
  0x9c   : > { %s467_s30 = sshll.u32 %s457_s21, 4  ;;  %p3236_p5 = pneg %p3802_p3  ;;  %s3812_s30 = int_to_ptr.vmem [resolvable:$true] %s467_s30 }
  0x9d   : > { %s4684_s10 = smov (!%p4627_p7, %s2940_s10), 0 }
  0x9e   : > { %s458_s1 = sld [smem:[%s4682_s25 + %s4684_s10]]  ;;  %s3239_s25 = scalar_lea.hbm %s4545_s4, 4096 }
  0xa4   : > { %s2555_s17 = sshll.u32 %s458_s1, 1 }
  0xa5   : > { %s464_s29 = sadd.s32 %s2555_s17, %s3628_s24 }
  0xa6   : > { %s2557_s14 = sshll.u32 %s464_s29, 6 }
  0xa7   : > { %s3817_s26 = scalar_lea.hbm %s4545_s4, %s2557_s14 }
  0xa8   : > { %s3234_s16 = scalar_lea.hbm %s3817_s26, 128  ;;  %p3240_p9 = scmp.lt.u32.totalorder %s3817_s26, %s4545_s4 }
  0xa9   : > { %p3235_p1 = scmp.ne.s32.totalorder %s3817_s26, %s3234_s16  ;;  %p3241_p12 = scmp.lt.u32.totalorder %s3239_s25, %s3234_s16 }
  0xaa   : > { %p3243_p0 = scmp.lt.u32.totalorder %s3234_s16, %s3817_s26 }
  0xab   : > { %p3237_p2 = pnand %p3236_p5, %p3235_p1  ;;  %p3242_p4 = por %p3241_p12, %p3240_p9 }
  0xad   : > { %p3238_p8 = pneg %p3237_p2  ;;  %p3244_p11 = por %p3243_p0, %p3242_p4 }
  0xaf   : > { %p3245_p6 = pnand %p3244_p11, %p3238_p8 }
  0xb1   : > { %3248 = shalt.err (!%p3245_p6)
}
  0xb2   : > { %s3249_s0 = scalar_lea.vmem %s3812_s30, 128  ;;  %s3428_s1 = smov [#allocation11]  }
  0xb3   : > { %p3250_p7 = scmp.ne.s32.totalorder %s3812_s30, %s3249_s0  ;;  %s3254_s21 = sshll.u32 %s3428_s1, 4  ;;  %s3255_s21 = int_to_ptr.vmem [resolvable:$false] %s3254_s21 }
  0xb4   : > { %s3256_s17 = scalar_lea.vmem %s3255_s21, 256  ;;  %p3257_p10 = scmp.lt.s32.totalorder %s3812_s30, %s3255_s21 }
  0xb5   : > { %p3252_p1 = pnand %p3250_p7, %p3236_p5  ;;  %p3258_p9 = scmp.lt.s32.totalorder %s3256_s17, %s3249_s0 }
  0xb7   : > { %p3253_p2 = pneg %p3252_p1  ;;  %p3259_p12 = por %p3258_p9, %p3257_p10 }
  0xb9   : > { %p3260_p4 = pnand %p3259_p12, %p3253_p2 }
  0xbb   : > { %3263 = shalt.err (!%p3260_p4)
}
  0xbc   : > { %2960 = dma.hbm_to_vmem [thread:$0]  (!%p3802_p3), %s3817_s26, 128, %s3812_s30, %s3669_s7, %s4619_s13, %s4619_s13, %s4618_s5  }
  0xbd   : > { %479 = sbr.rel (%p3659_p13) target bundleno = 1168 (0x490), region = 68  ;;  %s3851_s16 = sand.u32 (!%p3659_p13), 1, %s3396_s28  }
  0xbe   : > { %s2559_s29 = sshll.u32 (!%p3659_p13), %s3851_s16, 6  ;;  %s482_s14 = scalar_lea.sflag (!%p3659_p13), [#allocation7], %s3851_s16 }
  0xbf   : > { %s3857_s3 = scalar_lea.vmem (!%p3659_p13), [#allocation6], %s2559_s29  ;;  %p4628_p10 = scmp.ne.s32.totalorder (!%p3659_p13), %s4612_s6, 0 }
  0xc4   : > { %3351 = dma.done.wait (%p4628_p10), %s482_s14, 1024  }
  0xc5   : > { %3353 = vsyncadd (%p4628_p10), %s482_s14, 4294966272  ;;  %s4629_s26 = sld [smem:[#allocation22_spill]]  ;;  %s4630_s8 = sld [smem:[#allocation31_spill]] }
  0xc6   : > { %s490_s7 = sand.u32 1, %s3587_s19  }
  0xc7   : > { %s491_s30 = scalar_lea.sflag [#allocation10], %s490_s7 }
  0xcb   : > { %s492_s5 = sand.u32 1, %s4629_s26   ;;  %p4631_p13 = scmp.ne.s32.totalorder %s4630_s8, 0 }
  0xcc   : > { %s3865_s13 = sshll.u32 %s492_s5, 3 }
  0xcd   : > { %s494_s24 = scalar_lea.vmem [#allocation9], %s3865_s13 }
  0xce   : > { %3355 = dma.done.wait (%p4631_p13), %s491_s30, 128  }
  0xcf   : > { %3357 = vsyncadd (%p4631_p13), %s491_s30, 4294967168  ;;  %s501_s12 = sand.u32 1, %s3372_s22   ;;  %p4632_p3 = scmp.ne.s32.totalorder %s4623_s15, 0 }
  0xd0   : > { %s3873_s6 = sshll.u32 %s501_s12, 3 }
  0xd1   : > { %s503_s25 = scalar_lea.vmem [#allocation11], %s3873_s6 }
  0xd2   : > { %3359 = dma.done.wait (%p4632_p3), %s491_s30, 128  }
  0xd3   : > { %3361 = vsyncadd (%p4632_p3), %s491_s30, 4294967168  ;;  %vm991_vm0 = vcmask 27651   ;;  %vm992_vm1 = vsmask.f32 7950  ;;  %vm1024_vm3 = vcmask 24576   ;;  %vm625_vm5 = vcmask 130048  }
  0xd4   : > { %vm3880_vm2 = vmand %vm991_vm0, %vm992_vm1  ;;  %vm1025_vm4 = vsmask.f32 256  ;;  %v994_v1 = vld [vmem:[#allocation2 + $0x4] sm:$0x8]  ;;  %v997_v2 = vld [vmem:[#allocation2 + $0x18] sm:$0x8] }
  0xd5   : > { %v1000_v3 = vld [vmem:[#allocation2 + $0x2c] sm:$0x8]  ;;  %v995_v4 = vsel %vm3880_vm2, 0, %v994_v1  ;;  %v998_v5 = vsel %vm3880_vm2, 0, %v997_v2  ;;  %v1003_v7 = vld [vmem:[#allocation2 + $0x40] sm:$0x8]  ;;  %vm3904_vm6 = vmand %vm1024_vm3, %vm1025_vm4 }
  0xd6   : > { %v1001_v6 = vsel %vm3880_vm2, 0, %v1000_v3  ;;  %s4635_s10 = sld [smem:[#allocation36_spill]]  ;;  %996 = vst [vmem:[#allocation2 + $0x4] sm:$0x8] %v995_v4  ;;  %999 = vst [vmem:[#allocation2 + $0x18] sm:$0x8] %v998_v5 }
  0xd7   : > { %1002 = vst [vmem:[#allocation2 + $0x2c] sm:$0x8] %v1001_v6  ;;  %v1004_v9 = vsel %vm3880_vm2, 0, %v1003_v7  ;;  %v1006_v10 = vld [vmem:[#allocation2 + $0x54] sm:$0x8]  ;;  %v3896_v12 = vld [vmem:[%s3857_s3] sm:$0xff]  }
  0xd8   : > { %v1009_v11 = vld [vmem:[#allocation2 + $0x68] sm:$0x8]  ;;  %1005 = vst [vmem:[#allocation2 + $0x40] sm:$0x8] %v1004_v9  ;;  %v1007_v13 = vsel %vm3880_vm2, 0, %v1006_v10  ;;  %2802 = vmatprep.mubr.msk.bf16.mxu0 %vm625_vm5, %v3896_v12  ;;  %v3939_v44 = vld [vmem:[%s3857_s3 + $0x8] sm:$0xff]  }
  0xd9   : > { %v1010_v14 = vsel %vm3880_vm2, 0, %v1009_v11  ;;  %v1012_v15 = vld [vmem:[#allocation2 + $0x7c] sm:$0x8]  ;;  %v1015_v16 = vld [vmem:[#allocation2 + $0x90] sm:$0x8]  ;;  %v3953_v48 = vld [vmem:[%s3857_s3 + $0x18] sm:$0xff]  }
  0xda   : > { %1008 = vst [vmem:[#allocation2 + $0x54] sm:$0x8] %v1007_v13  ;;  %1011 = vst [vmem:[#allocation2 + $0x68] sm:$0x8] %v1010_v14  ;;  %v1013_v18 = vsel %vm3880_vm2, 0, %v1012_v15  ;;  %v1016_v19 = vsel %vm3880_vm2, 0, %v1015_v16 }
  0xdb   : > { %v1018_v20 = vld [vmem:[#allocation2 + $0xa4] sm:$0x8]  ;;  %v1021_v21 = vld [vmem:[#allocation2 + $0xb8] sm:$0x8]  ;;  %1014 = vst [vmem:[#allocation2 + $0x7c] sm:$0x8] %v1013_v18 }
  0xdc   : > { %v3088_v8 = vld [vmem:[%s4635_s10] sm:$0xff]   ;;  %1017 = vst [vmem:[#allocation2 + $0x90] sm:$0x8] %v1016_v19  ;;  %v1019_v22 = vsel %vm3880_vm2, 0, %v1018_v20  ;;  %v1022_v23 = vsel %vm3880_vm2, 0, %v1021_v21  ;;  %v3942_v45 = vld [vmem:[%s3857_s3 + $0x10] sm:$0xff]  }
  0xdd   : > { %2800 = vmatprep.subr.bf16.mxu0 %v3088_v8  ;;  %2818 = vmatprep.subr.bf16.mxu1 %v3088_v8  ;;  %v1027_v24 = vld [vmem:[#allocation2 + $0x10] sm:$0x1]  ;;  %v1030_v25 = vld [vmem:[#allocation2 + $0x24] sm:$0x1]  ;;  %1020 = vst [vmem:[#allocation2 + $0xa4] sm:$0x8] %v1019_v22 }
  0xde   : > { %2801 = vmatpush3.bf16.msra.mxu0 %v3088_v8  ;;  %2819 = vmatpush3.bf16.msra.mxu1 %v3088_v8  ;;  %1023 = vst [vmem:[#allocation2 + $0xb8] sm:$0x8] %v1022_v23  ;;  %v1028_v26 = vsel %vm3904_vm6, 0, %v1027_v24  ;;  %v1031_v27 = vsel %vm3904_vm6, 0, %v1030_v25  ;;  %v1033_v28 = vld [vmem:[#allocation2 + $0x38] sm:$0x1] }
  0xdf   : > { %v1036_v29 = vld [vmem:[#allocation2 + $0x4c] sm:$0x1]  ;;  %1029 = vst [vmem:[#allocation2 + $0x10] sm:$0x1] %v1028_v26  ;;  %1032 = vst [vmem:[#allocation2 + $0x24] sm:$0x1] %v1031_v27 }
  0xe0   : > { %v1034_v30 = vsel %vm3904_vm6, 0, %v1033_v28  ;;  %v1037_v31 = vsel %vm3904_vm6, 0, %v1036_v29  ;;  %v1039_v32 = vld [vmem:[#allocation2 + $0x60] sm:$0x1]  ;;  %v1042_v33 = vld [vmem:[#allocation2 + $0x74] sm:$0x1] }
  0xe1   : > { %1035 = vst [vmem:[#allocation2 + $0x38] sm:$0x1] %v1034_v30  ;;  %1038 = vst [vmem:[#allocation2 + $0x4c] sm:$0x1] %v1037_v31  ;;  %v1040_v34 = vsel %vm3904_vm6, 0, %v1039_v32  ;;  %v1043_v35 = vsel %vm3904_vm6, 0, %v1042_v33  ;;  %2803 = vmatmul.mubr.msk.bf16.vlgmr.msra.gmra.mrb[0].mxu0 %vm625_vm5, %v3939_v44 }
  0xe2   : > { %v1045_v36 = vld [vmem:[#allocation2 + $0x88] sm:$0x1]  ;;  %v1048_v37 = vld [vmem:[#allocation2 + $0x9c] sm:$0x1]  ;;  %1041 = vst [vmem:[#allocation2 + $0x60] sm:$0x1] %v1040_v34  ;;  %2806 = vmatprep.mubr.msk.bf16.mxu0 %vm625_vm5, %v3942_v45 }
  0xe3   : > { %1044 = vst [vmem:[#allocation2 + $0x74] sm:$0x1] %v1043_v35  ;;  %v1046_v38 = vsel %vm3904_vm6, 0, %v1045_v36  ;;  %v1049_v39 = vsel %vm3904_vm6, 0, %v1048_v37  ;;  %v1051_v40 = vld [vmem:[#allocation2 + $0xb0] sm:$0x1] }
  0xe4   : > { %v1054_v41 = vld [vmem:[#allocation2 + $0xc4] sm:$0x1]  ;;  %1047 = vst [vmem:[#allocation2 + $0x88] sm:$0x1] %v1046_v38  ;;  %1050 = vst [vmem:[#allocation2 + $0x9c] sm:$0x1] %v1049_v39 }
  0xe5   : > { %v1052_v42 = vsel %vm3904_vm6, 0, %v1051_v40  ;;  %v1055_v43 = vsel %vm3904_vm6, 0, %v1054_v41  ;;  %v3095_v46 = vld [vmem:[%s494_s24] sm:$0xff]   ;;  %v3096_v47 = vld [vmem:[%s503_s25] sm:$0xff]   ;;  %s4638_s1 = sld [smem:[#allocation37_spill]]  ;;  %s4639_s14 = sld [smem:[#allocation38_spill]] }
  0xe6   : > { %1053 = vst [vmem:[#allocation2 + $0xb0] sm:$0x1] %v1052_v42  ;;  %1056 = vst [vmem:[#allocation2 + $0xc4] sm:$0x1] %v1055_v43  ;;  %2820 = vmatprep.mubr.msk.bf16.mxu1 %vm625_vm5, %v3095_v46  ;;  %v3957_v49 = vld [vmem:[%s3857_s3 + $0x20] sm:$0xff]   ;;  %v3965_v50 = vld [vmem:[%s3857_s3 + $0x28] sm:$0xff]  }
  0xe7   : > { %2821 = vmatmul.mubr.msk.bf16.vlgmr.msra.gmra.mrb[0].mxu1 %vm625_vm5, %v3096_v47  ;;  %v3968_v51 = vld [vmem:[%s3857_s3 + $0x30] sm:$0xff]   ;;  %v3975_v52 = vld [vmem:[%s3857_s3 + $0x38] sm:$0xff]   ;;  %vm872_vm7 = vcmask 27648   ;;  %s4051_s3 = scalar_lea.vmem [#allocation12], %s2559_s29  ;;  %s4640_s26 = sld [smem:[#allocation25_spill]] }
  0xe9   : > { %2807 = vmatmul.mubr.msk.bf16.gmra.mrb[4].mxu0 %vm625_vm5, %v3953_v48 }
  0xea   : > { %2810 = vmatprep.mubr.msk.bf16.mxu0 %vm625_vm5, %v3957_v49 }
  0xeb   : > { %v3982_v53 = vld [vmem:[%s4638_s1] ss:$0 sm:$0xff] }
  0xec   : > { %v3987_v54 = vld [vmem:[%s4639_s14] ss:$0 sm:$0xff] }
  0xed   : > { %p2606_p5 = scmp.ne.s32.totalorder %s4640_s26, 0 }
  0xf1   : > { %2811 = vmatmul.mubr.msk.bf16.gmra.mrb[8].mxu0 %vm625_vm5, %v3965_v50 }
  0xf2   : > { %2814 = vmatprep.mubr.msk.bf16.mxu0 %vm625_vm5, %v3968_v51 }
  0xf9   : > { %2815 = vmatmul.mubr.msk.bf16.gmra.mrb[12].mxu0 %vm625_vm5, %v3975_v52 }
 0x1b4   : > { %v2804_v55 = vpop.f32.mrb[0].mxu0 }
 0x1b5   : > { %v755_v56 = vmul.f32 %v2804_v55, %v3982_v53  ;;  %v684_v57 = vpop.f32.mrb[1].mxu0 }
 0x1b6   : > { %v753_v58 = vmul.f32 %v3982_v53, %v684_v57  ;;  %v2805_v59 = vpop.f32.mrb[2].mxu0 }
 0x1b7   : > { %v777_v61 = vadd.f32 %v3987_v54, %v755_v56  ;;  %v756_v62 = vmul.f32 %v2805_v59, %v3982_v53  ;;  %v687_v63 = vpop.f32.mrb[3].mxu0 }
 0x1b8   : > { %v775_v2 = vadd.f32 %v3987_v54, %v753_v58  ;;  %v754_v3 = vmul.f32 %v3982_v53, %v687_v63 }
 0x1b9   : > { %v793_v6 = vmax.f32 %v777_v61, 0.0  ;;  %v778_v7 = vadd.f32 %v3987_v54, %v756_v62 }
 0x1ba   : > { %v2822_v60 = vpop.f32.mrb[0].mxu1  ;;  %v791_v11 = vmax.f32 %v775_v2, 0.0  ;;  %v776_v13 = vadd.f32 %v3987_v54, %v754_v3 }
 0x1bb   : > { %v960_v0 = vmul.f32 %v2822_v60, %v3982_v53  ;;  %v943_v1 = vpop.f32.mrb[1].mxu1  ;;  %v2717_v16 = vpack.c.bf16 %v793_v6, %v793_v6  ;;  %v794_v17 = vmax.f32 %v778_v7, 0.0 }
 0x1bc   : > { %v958_v4 = vmul.f32 %v3982_v53, %v943_v1  ;;  %v2823_v5 = vpop.f32.mrb[2].mxu1  ;;  %v2715_v20 = vpack.c.bf16 %v791_v11, %v791_v11  ;;  %v792_v21 = vmax.f32 %v776_v13, 0.0  ;;  %v2808_v22 = vpop.f32.mrb[4].mxu0 }
 0x1bd   : > { %v964_v8 = vadd.f32 %v3987_v54, %v960_v0  ;;  %v961_v9 = vmul.f32 %v2823_v5, %v3982_v53  ;;  %v946_v10 = vpop.f32.mrb[3].mxu1  ;;  %875 = vst.msk [vmem:[#allocation2 + $0x30] sm:$0xf] %vm872_vm7, %v2717_v16  ;;  %v2718_v25 = vpack.c.bf16 %v794_v17, %v794_v17  ;;  %v759_v26 = vmul.f32 %v2808_v22, %v3982_v53  ;;  %v700_v27 = vpop.f32.mrb[5].mxu0 }
 0x1be   : > { %v962_v14 = vadd.f32 %v3987_v54, %v958_v4  ;;  %v959_v15 = vmul.f32 %v3982_v53, %v946_v10  ;;  %873 = vst.msk [vmem:[#allocation2 + $0x1c] sm:$0xf] %vm872_vm7, %v2715_v20  ;;  %v2716_v30 = vpack.c.bf16 %v792_v21, %v792_v21  ;;  %v757_v31 = vmul.f32 %v3982_v53, %v700_v27  ;;  %v2809_v32 = vpop.f32.mrb[6].mxu0 }
 0x1bf   : > { %v968_v18 = vmax.f32 %v964_v8, 0.0  ;;  %v965_v19 = vadd.f32 %v3987_v54, %v961_v9  ;;  %876 = vst.msk [vmem:[#allocation2 + $0x34] sm:$0xf] %vm872_vm7, %v2718_v25  ;;  %v781_v35 = vadd.f32 %v3987_v54, %v759_v26  ;;  %v760_v36 = vmul.f32 %v2809_v32, %v3982_v53  ;;  %v703_v37 = vpop.f32.mrb[7].mxu0 }
 0x1c0   : > { %v966_v23 = vmax.f32 %v962_v14, 0.0  ;;  %v963_v24 = vadd.f32 %v3987_v54, %v959_v15  ;;  %874 = vst.msk [vmem:[#allocation2 + $0x20] sm:$0xf] %vm872_vm7, %v2716_v30  ;;  %v779_v39 = vadd.f32 %v3987_v54, %v757_v31  ;;  %v758_v40 = vmul.f32 %v3982_v53, %v703_v37 }
 0x1c1   : > { %v2733_v28 = vpack.c.bf16 %v968_v18, %v968_v18  ;;  %v969_v29 = vmax.f32 %v965_v19, 0.0  ;;  %v797_v42 = vmax.f32 %v781_v35, 0.0  ;;  %v782_v43 = vadd.f32 %v3987_v54, %v760_v36 }
 0x1c2   : > { %v2731_v33 = vpack.c.bf16 %v966_v23, %v966_v23  ;;  %v967_v34 = vmax.f32 %v963_v24, 0.0  ;;  %v795_v46 = vmax.f32 %v779_v39, 0.0  ;;  %v780_v47 = vadd.f32 %v3987_v54, %v758_v40 }
 0x1c3   : > { %989 = vst.msk [vmem:[#allocation2 + $0xbc] sm:$0xf] %vm872_vm7, %v2733_v28  ;;  %v2734_v38 = vpack.c.bf16 %v969_v29, %v969_v29  ;;  %v2721_v55 = vpack.c.bf16 %v797_v42, %v797_v42  ;;  %v798_v56 = vmax.f32 %v782_v43, 0.0 }
 0x1c4   : > { %979 = vst.msk [vmem:[#allocation2 + $0x8] sm:$0xf] %vm872_vm7, %v2731_v33  ;;  %v2732_v41 = vpack.c.bf16 %v967_v34, %v967_v34  ;;  %v2719_v57 = vpack.c.bf16 %v795_v46, %v795_v46  ;;  %v796_v58 = vmax.f32 %v780_v47, 0.0  ;;  %v2812_v59 = vpop.f32.mrb[8].mxu0 }
 0x1c5   : > { %990 = vst.msk [vmem:[#allocation2 + $0xc0] sm:$0xf] %vm872_vm7, %v2734_v38  ;;  %879 = vst.msk [vmem:[#allocation2 + $0x58] sm:$0xf] %vm872_vm7, %v2721_v55  ;;  %v2722_v60 = vpack.c.bf16 %v798_v56, %v798_v56  ;;  %v763_v61 = vmul.f32 %v2812_v59, %v3982_v53  ;;  %v716_v62 = vpop.f32.mrb[9].mxu0 }
 0x1c6   : > { %980 = vst.msk [vmem:[#allocation2 + $0xc] sm:$0xf] %vm872_vm7, %v2732_v41  ;;  %877 = vst.msk [vmem:[#allocation2 + $0x44] sm:$0xf] %vm872_vm7, %v2719_v57  ;;  %v2720_v63 = vpack.c.bf16 %v796_v58, %v796_v58  ;;  %v761_v0 = vmul.f32 %v3982_v53, %v716_v62  ;;  %v2813_v1 = vpop.f32.mrb[10].mxu0 }
 0x1c7   : > { %880 = vst.msk [vmem:[#allocation2 + $0x5c] sm:$0xf] %vm872_vm7, %v2722_v60  ;;  %v785_v2 = vadd.f32 %v3987_v54, %v763_v61  ;;  %v764_v3 = vmul.f32 %v2813_v1, %v3982_v53  ;;  %v719_v4 = vpop.f32.mrb[11].mxu0 }
 0x1c8   : > { %878 = vst.msk [vmem:[#allocation2 + $0x48] sm:$0xf] %vm872_vm7, %v2720_v63  ;;  %v783_v5 = vadd.f32 %v3987_v54, %v761_v0  ;;  %v762_v6 = vmul.f32 %v3982_v53, %v719_v4 }
 0x1c9   : > { %v801_v7 = vmax.f32 %v785_v2, 0.0  ;;  %v786_v8 = vadd.f32 %v3987_v54, %v764_v3 }
 0x1ca   : > { %v799_v9 = vmax.f32 %v783_v5, 0.0  ;;  %v784_v10 = vadd.f32 %v3987_v54, %v762_v6 }
 0x1cb   : > { %v2725_v11 = vpack.c.bf16 %v801_v7, %v801_v7  ;;  %v802_v13 = vmax.f32 %v786_v8, 0.0 }
 0x1cc   : > { %v2723_v14 = vpack.c.bf16 %v799_v9, %v799_v9  ;;  %v800_v15 = vmax.f32 %v784_v10, 0.0  ;;  %v2816_v16 = vpop.f32.mrb[12].mxu0 }
 0x1cd   : > { %883 = vst.msk [vmem:[#allocation2 + $0x80] sm:$0xf] %vm872_vm7, %v2725_v11  ;;  %v2726_v17 = vpack.c.bf16 %v802_v13, %v802_v13  ;;  %v767_v18 = vmul.f32 %v2816_v16, %v3982_v53  ;;  %v732_v19 = vpop.f32.mrb[13].mxu0 }
 0x1ce   : > { %881 = vst.msk [vmem:[#allocation2 + $0x6c] sm:$0xf] %vm872_vm7, %v2723_v14  ;;  %v2724_v20 = vpack.c.bf16 %v800_v15, %v800_v15  ;;  %v765_v21 = vmul.f32 %v3982_v53, %v732_v19  ;;  %v2817_v22 = vpop.f32.mrb[14].mxu0 }
 0x1cf   : > { %884 = vst.msk [vmem:[#allocation2 + $0x84] sm:$0xf] %vm872_vm7, %v2726_v17  ;;  %v789_v23 = vadd.f32 %v3987_v54, %v767_v18  ;;  %v768_v24 = vmul.f32 %v2817_v22, %v3982_v53  ;;  %v735_v25 = vpop.f32.mrb[15].mxu0 }
 0x1d0   : > { %882 = vst.msk [vmem:[#allocation2 + $0x70] sm:$0xf] %vm872_vm7, %v2724_v20  ;;  %v787_v26 = vadd.f32 %v3987_v54, %v765_v21  ;;  %v766_v27 = vmul.f32 %v3982_v53, %v735_v25  ;;  %v3429_v53 = vmov (!%p2606_p5), 0  }
 0x1d1   : > { %v805_v28 = vmax.f32 %v789_v23, 0.0  ;;  %v790_v29 = vadd.f32 %v3987_v54, %v768_v24  ;;  %1061 = vst.msk [vmem:[#allocation2 + $0x8] sm:$0xf] (!%p2606_p5), %vm872_vm7, %v3429_v53  ;;  %1062 = vst.msk [vmem:[#allocation2 + $0xc] sm:$0xf] (!%p2606_p5), %vm872_vm7, %v3429_v53 }
 0x1d2   : > { %v803_v30 = vmax.f32 %v787_v26, 0.0  ;;  %v788_v31 = vadd.f32 %v3987_v54, %v766_v27  ;;  %1060 = sbr.rel (%p2606_p5) target bundleno = 473 (0x1d9), region = 84 }
 0x1d3   : > { %v2729_v32 = vpack.c.bf16 %v805_v28, %v805_v28  ;;  %v806_v33 = vmax.f32 %v790_v29, 0.0 }
 0x1d4   : > { %v2727_v34 = vpack.c.bf16 %v803_v30, %v803_v30  ;;  %v804_v35 = vmax.f32 %v788_v31, 0.0 }
 0x1d5   : > { %887 = vst.msk [vmem:[#allocation2 + $0xa8] sm:$0xf] %vm872_vm7, %v2729_v32  ;;  %v2730_v36 = vpack.c.bf16 %v806_v33, %v806_v33 }
 0x1d6   : > { %885 = vst.msk [vmem:[#allocation2 + $0x94] sm:$0xf] %vm872_vm7, %v2727_v34  ;;  %v2728_v37 = vpack.c.bf16 %v804_v35, %v804_v35 }
 0x1d7   : > { %888 = vst.msk [vmem:[#allocation2 + $0xac] sm:$0xf] %vm872_vm7, %v2730_v36 }
 0x1d8   : > { %886 = vst.msk [vmem:[#allocation2 + $0x98] sm:$0xf] %vm872_vm7, %v2728_v37 }
 0x1d9 PF: > { %s4641_s8 = sld [smem:[#allocation25_spill]] }
 0x1df   : > { %p2607_p8 = scmp.ne.s32.totalorder %s4641_s8, 1 }
 0x1e0   : > { %v3430_v54 = vmov (!%p2607_p8), 0  }
 0x1e1   : > { %1066 = sbr.rel (%p2607_p8) target bundleno = 488 (0x1e8), region = 88  ;;  %1067 = vst.msk [vmem:[#allocation2 + $0xbc] sm:$0xf] (!%p2607_p8), %vm872_vm7, %v3430_v54  ;;  %1068 = vst.msk [vmem:[#allocation2 + $0xc0] sm:$0xf] (!%p2607_p8), %vm872_vm7, %v3430_v54 }
 0x1e8 PF: > { %v4059_v38 = vld [vmem:[#allocation2 + $0xa8] sm:$0xf]  ;;  %v4061_v39 = vld [vmem:[#allocation2 + $0xac] sm:$0xf]  ;;  %v4065_v41 = vld [vmem:[#allocation2 + $0x94] sm:$0xf] }
 0x1e9   : > { %v2636_v40 = vcombine.low %v4059_v38, %v4061_v39  ;;  %v4067_v42 = vld [vmem:[#allocation2 + $0x98] sm:$0xf]  ;;  %v3109_v46 = vld [vmem:[#allocation2 + $0x9c] ss:$0 sps:$4 sm:$0x11]   ;;  %vm1329_vm8 = vcmask 1042432  }
 0x1ea   : > { %v2635_v43 = vcombine.low %v4065_v41, %v4067_v42  ;;  %v3110_v55 = vld [vmem:[#allocation2 + $0xb0] ss:$0 sps:$4 sm:$0x11]   ;;  %v1352_v59 = vrot.slane %v3109_v46, 5  ;;  %v4071_v62 = vld [vmem:[#allocation2 + $0x1c] sm:$0xf] }
 0x1eb   : > { %v1354_v47 = vrot.slane %v2636_v40, 5  ;;  %v1264_v56 = vshrl.u32 %v2636_v40, 16  ;;  %v1267_v57 = vshll.u32 %v2636_v40, 16  ;;  %s3431_s29 = smov 8   ;;  %v4074_v1 = vld [vmem:[#allocation2 + $0x20] sm:$0xf] }
 0x1ec   : > { %v1351_v58 = vrot.slane %v2635_v43, 5  ;;  %v1256_v60 = vshrl.u32 %v2635_v43, 16  ;;  %v1259_v61 = vshll.u32 %v2635_v43, 16  ;;  %v2629_v4 = vcombine.low %v4071_v62, %v4074_v1  ;;  %v4079_v5 = vld [vmem:[#allocation2 + $0x8] sm:$0xf]  ;;  %s3432_s7 = smov 4  }
 0x1ed   : > { %1392 = vrot.lane.b32.xlu0 %v1354_v47, %s3431_s29  ;;  %v1266_v63 = vrot.slane %v1264_v56, 4  ;;  %v1269_v0 = vrot.slane %v1267_v57, 5  ;;  %v4081_v6 = vld [vmem:[#allocation2 + $0xc] sm:$0xf]  ;;  %v1355_v8 = vrot.slane %v3110_v55, 5  ;;  %vm1663_vm9 = vcmask 1045504  }
 0x1ee   : > { %1388 = vrot.lane.b32.xlu1 %v1351_v58, %s3431_s29  ;;  %v1258_v2 = vrot.slane %v1256_v60, 4  ;;  %v1261_v3 = vrot.slane %v1259_v61, 5  ;;  %v1353_v7 = vsel %vm1329_vm8, %v1351_v58, %v1352_v59  ;;  %v2628_v9 = vcombine.low %v4079_v5, %v4081_v6  ;;  %v3113_v16 = vld [vmem:[#allocation2 + $0x10] ss:$0 sps:$4 sm:$0x11]   ;;  %s4642_s30 = sld [smem:[#allocation39_spill]] }
 0x1ef   : > { %v1208_v11 = vshrl.u32 %v2629_v4, 16  ;;  %v1211_v13 = vshll.u32 %v2629_v4, 16  ;;  %v1270_v17 = vor.u32 %v1269_v0, %v1266_v63  ;;  %v4088_v20 = vld [vmem:[#allocation2 + $0x44] sm:$0xf]  ;;  %v1356_v21 = vsel %vm1329_vm8, %v1354_v47, %v1355_v8  ;;  %v4091_v24 = vld [vmem:[#allocation2 + $0x48] sm:$0xf] }
 0x1f0   : > { %v1262_v10 = vor.u32 %v1261_v3, %v1258_v2  ;;  %v1200_v14 = vshrl.u32 %v2628_v9, 16  ;;  %v1203_v15 = vshll.u32 %v2628_v9, 16  ;;  %v4093_v25 = vld [vmem:[#allocation2 + $0x30] sm:$0xf]  ;;  %v4095_v26 = vld [vmem:[#allocation2 + $0x34] sm:$0xf]  ;;  %v4099_v27 = vcombine.low %v4088_v20, %v4091_v24 }
 0x1f1   : > { %v1210_v18 = vrot.slane %v1208_v11, 4  ;;  %v1213_v19 = vrot.slane %v1211_v13, 5  ;;  %v2630_v30 = vcombine.low %v4093_v25, %v4095_v26  ;;  %v1330_v31 = vrot.slane %v2628_v9, 5  ;;  %v3114_v33 = vld [vmem:[#allocation2 + $0x24] ss:$0 sps:$4 sm:$0x11]  }
 0x1f2   : > { %1390 = vrot.lane.b32.xlu1 %v1353_v7, %s3431_s29  ;;  %1293 = vrot.lane.b32.xlu0 %v1262_v10, %s3432_s7  ;;  %v1202_v22 = vrot.slane %v1200_v14, 4  ;;  %v1205_v23 = vrot.slane %v1203_v15, 5  ;;  %v1331_v32 = vrot.slane %v3113_v16, 5  ;;  %v1224_v34 = vshrl.u32 %v4099_v27, 16  ;;  %v4110_v55 = vld [vmem:[#allocation2 + $0x6c] sm:$0xf] }
 0x1f3   : > { %v1214_v28 = vor.u32 %v1213_v19, %v1210_v18  ;;  %v1227_v35 = vshll.u32 %v4099_v27, 16  ;;  %v1216_v36 = vshrl.u32 %v2630_v30, 16  ;;  %v1219_v37 = vshll.u32 %v2630_v30, 16  ;;  %v3117_v47 = vld [vmem:[#allocation2 + $0x38] ss:$0 sps:$4 sm:$0x11]  }
 0x1f4   : > { %v1206_v29 = vor.u32 %v1205_v23, %v1202_v22  ;;  %v1332_v53 = vsel %vm1329_vm8, %v1330_v31, %v1331_v32  ;;  %v1333_v54 = vrot.slane %v2629_v4, 5  ;;  %v1334_v40 = vrot.slane %v3114_v33, 5  ;;  %v4114_v58 = vld [vmem:[#allocation2 + $0x70] sm:$0xf]  ;;  %v4117_v60 = vld [vmem:[#allocation2 + $0x58] sm:$0xf]  ;;  %s4643_s12 = smov %s4642_s30 }
 0x1f5   : > { %v1226_v43 = vrot.slane %v1224_v34, 4  ;;  %v1229_v46 = vrot.slane %v1227_v35, 5  ;;  %v1218_v56 = vrot.slane %v1216_v36, 4  ;;  %v1221_v57 = vrot.slane %v1219_v37, 5  ;;  %v4119_v61 = vld [vmem:[#allocation2 + $0x5c] sm:$0xf] }
 0x1f6   : > { %1394 = vrot.lane.b32.xlu1 %v1356_v21, %s3431_s29  ;;  %1295 = vrot.lane.b32.xlu0 %v1270_v17, %s3432_s7  ;;  %v1335_v59 = vsel %vm1329_vm8, %v1333_v54, %v1334_v40  ;;  %v4123_v63 = vcombine.low %v4110_v55, %v4114_v58  ;;  %v2632_v3 = vcombine.low %v4117_v60, %v4119_v61  ;;  %v1336_v4 = vrot.slane %v2630_v30, 5  ;;  %v3118_v8 = vld [vmem:[#allocation2 + $0x4c] ss:$0 sps:$4 sm:$0x11]   ;;  %v4144_v19 = vld [vmem:[%s4643_s12] sm:$0x3f]  }
 0x1f7   : > { %v1230_v0 = vor.u32 %v1229_v46, %v1226_v43  ;;  %v1222_v2 = vor.u32 %v1221_v57, %v1218_v56  ;;  %v1337_v7 = vrot.slane %v3117_v47, 5  ;;  %v1339_v9 = vrot.slane %v4099_v27, 5  ;;  %v3135_v10 = vld [vmem:[%s4642_s30 + $0x8] sm:$0x3f]   ;;  %v4149_v30 = vld [vmem:[#allocation2 + $0x80] sm:$0xf] }
 0x1f8   : > { %v1240_v11 = vshrl.u32 %v4123_v63, 16  ;;  %v1243_v13 = vshll.u32 %v4123_v63, 16  ;;  %v1232_v14 = vshrl.u32 %v2632_v3, 16  ;;  %v1235_v15 = vshll.u32 %v2632_v3, 16  ;;  %2931 = vmatprep.subr.msk.bf16.mxu1 %vm1663_vm9, %v3135_v10  ;;  %2930 = vmatprep.subr.msk.bf16.mxu0 %vm1663_vm9, %v3135_v10  ;;  %s4644_s2 = sld [smem:[#allocation42_spill]]  ;;  %s4645_s21 = sld [smem:[#allocation40_spill]] }
 0x1f9   : > { %v1338_v16 = vsel %vm1329_vm8, %v1336_v4, %v1337_v7  ;;  %v1340_v17 = vrot.slane %v3118_v8, 5  ;;  %v1665_v18 = vsel %vm1663_vm9, %v3135_v10, 0  ;;  %v3121_v21 = vld [vmem:[#allocation2 + $0x60] ss:$0 sps:$4 sm:$0x11]   ;;  %v1342_v36 = vrot.slane %v2632_v3, 5 }
 0x1fa   : > { %1281 = vrot.lane.b32.xlu1 %v1214_v28, %s3432_s7  ;;  %1279 = vrot.lane.b32.xlu0 %v1206_v29, %s3432_s7  ;;  %v1242_v22 = vrot.slane %v1240_v11, 4  ;;  %v1245_v23 = vrot.slane %v1243_v13, 5  ;;  %v1234_v27 = vrot.slane %v1232_v14, 4  ;;  %v1237_v28 = vrot.slane %v1235_v15, 5  ;;  %s4646_s26 = sld [smem:[#allocation41_spill]]  ;;  %s4647_s5 = sld [smem:[#allocation43_spill]] }
 0x1fb   : > { %2897 = vmatpush3.bf16.msra.mxu1 %v1665_v18  ;;  %2825 = vmatpush3.bf16.msra.mxu0 %v1665_v18  ;;  %v1341_v29 = vsel %vm1329_vm8, %v1339_v9, %v1340_v17  ;;  %v3122_v34 = vld [vmem:[#allocation2 + $0x74] ss:$0 sps:$4 sm:$0x11]   ;;  %v1343_v37 = vrot.slane %v3121_v21, 5  ;;  %v1345_v56 = vrot.slane %v4123_v63, 5  ;;  %vm1400_vm10 = vcmask 31744  }
 0x1fc   : > { %2932 = vmatprep.subr.msk.bf16.mxu1 %vm1663_vm9, %v4144_v19  ;;  %v1246_v32 = vor.u32 %v1245_v23, %v1242_v22  ;;  %v1238_v33 = vor.u32 %v1237_v28, %v1234_v27  ;;  %v1346_v57 = vrot.slane %v3122_v34, 5  ;;  %v3124_v7 = vld [vmem:[#allocation2 + $0x88] ss:$0 sps:$4 sm:$0x11]   ;;  %v1090_v21 = vld [vmem:[#allocation2 + $0x90] sm:$0x8]  ;;  %v2623_v27 = vcombine.low %v4067_v42, %v4067_v42 }
 0x1fd   : > { %v1344_v47 = vsel %vm1329_vm8, %v1342_v36, %v1343_v37  ;;  %v1349_v11 = vrot.slane %v3124_v7, 5  ;;  %v3126_v13 = vld [vmem:[#allocation2 + $0xc4] ss:$0 sps:$4 sm:$0x11]   ;;  %v2622_v28 = vcombine.low %v1090_v21, %v4065_v41  ;;  %vm1451_vm11 = vcmask 64512   ;;  %s4648_s24 = sld [smem:[#allocation44_spill]] }
 0x1fe   : > { %1362 = vrot.lane.b32.xlu1 %v1332_v53, %s3431_s29  ;;  %1360 = vrot.lane.b32.xlu0 %v1330_v31, %s3431_s29  ;;  %v4151_v31 = vld [vmem:[#allocation2 + $0x84] sm:$0xf]  ;;  %v4159_v53 = vld [vmem:[#allocation2 + $0xbc] sm:$0xf]  ;;  %v1358_v17 = vrot.slane %v3126_v13, 5  ;;  %v2625_v42 = vcombine.low %v4061_v39, %v4061_v39  ;;  %vm1638_vm13 = vcmask 97280  }
 0x1ff   : > { %v2634_v35 = vcombine.low %v4149_v30, %v4151_v31  ;;  %vm1492_vm12 = vsmask.f32 4352  ;;  %vm2109_vm14 = vcmask 1041408   ;;  %vm2368_vm15 = vcmask 125952   ;;  %s4649_s6 = sld [smem:[#allocation25_spill]]  ;;  %s4650_s25 = sld [smem:[#allocation26_spill]] }
 0x200   : > { %s2402_s0 = sshll.u32 %s4051_s3, 4  ;;  %s4651_s17 = sld [smem:[#allocation45_spill]]  ;;  %s4459_s0 = int_to_ptr.vmem [resolvable:$true] %s2402_s0 }
 0x201   : > { %v1248_v40 = vshrl.u32 %v2634_v35, 16  ;;  %v1251_v43 = vshll.u32 %v2634_v35, 16  ;;  %s2386_s8 = scalar_lea.sflag [#allocation8], %s3851_s16  ;;  %p4653_p11 = scmp.ne.s32.totalorder %s4613_s11, 0 }
 0x202   : > { %1366 = vrot.lane.b32.xlu1 %v1335_v59, %s3431_s29  ;;  %1364 = vrot.lane.b32.xlu0 %v1333_v54, %s3431_s29  ;;  %v4161_v54 = vld [vmem:[#allocation2 + $0xc0] sm:$0xf] }
 0x203   : > { %v2637_v46 = vcombine.low %v4159_v53, %v4161_v54  ;;  %v1250_v59 = vrot.slane %v1248_v40, 4 }
 0x205   : > { %v1275_v3 = vshll.u32 %v2637_v46, 16  ;;  %s2751_s19 = sshll.u32 %s4649_s6, 4  ;;  %s2710_s15 = sshll.u32 %s4650_s25, 5 }
 0x206   : > { %1285 = vrot.lane.b32.xlu1 %v1230_v0, %s3432_s7  ;;  %1283 = vrot.lane.b32.xlu0 %v1222_v2, %s3432_s7  ;;  %v1253_v0 = vrot.slane %v1251_v43, 5  ;;  %v1272_v2 = vshrl.u32 %v2637_v46, 16  ;;  %s2399_s10 = sadd.s32 %s2751_s19, %s2710_s15  ;;  %s4652_s14 = smov %s4651_s17 }
 0x207   : > { %v1277_v63 = vrot.slane %v1275_v3, 5 }
 0x208   : > { %v1254_v8 = vor.u32 %v1253_v0, %v1250_v59  ;;  %v1274_v10 = vrot.slane %v1272_v2, 4  ;;  %v2609_v0 = vcombine.low %v4081_v6, %v4081_v6 }
 0x20a   : > { %1370 = vrot.lane.b32.xlu1 %v1338_v16, %s3431_s29  ;;  %1368 = vrot.lane.b32.xlu0 %v1336_v4, %s3431_s29  ;;  %v1347_v4 = vsel %vm1329_vm8, %v1345_v56, %v1346_v57  ;;  %v1278_v14 = vor.u32 %v1277_v63, %v1274_v10  ;;  %v1357_v16 = vrot.slane %v2637_v46, 5 }
 0x20c   : > { %v1359_v18 = vsel %vm1329_vm8, %v1357_v16, %v1358_v17  ;;  %v1072_v17 = vld [vmem:[#allocation2 + $0x18] sm:$0x8] }
 0x20e   : > { %1374 = vrot.lane.b32.xlu1 %v1341_v29, %s3431_s29  ;;  %1372 = vrot.lane.b32.xlu0 %v1339_v9, %s3431_s29  ;;  %v1348_v9 = vrot.slane %v2634_v35, 5  ;;  %v1093_v29 = vld [vmem:[#allocation2 + $0xa4] sm:$0x8] }
 0x20f   : > { %v2624_v40 = vcombine.low %v1093_v29, %v4059_v38 }
 0x210   : > { %v1350_v15 = vsel %vm1329_vm8, %v1348_v9, %v1349_v11 }
 0x212   : > { %1289 = vrot.lane.b32.xlu1 %v1246_v32, %s3432_s7  ;;  %1287 = vrot.lane.b32.xlu0 %v1238_v33, %s3432_s7 }
 0x216   : > { %1378 = vrot.lane.b32.xlu1 %v1344_v47, %s3431_s29  ;;  %1376 = vrot.lane.b32.xlu0 %v1342_v36, %s3431_s29 }
 0x21a   : > { %1382 = vrot.lane.b32.xlu1 %v1347_v4, %s3431_s29  ;;  %1380 = vrot.lane.b32.xlu0 %v1345_v56, %s3431_s29  ;;  %v1069_v56 = vld [vmem:[#allocation2 + $0x4] sm:$0x8] }
 0x21b   : > { %v2608_v39 = vcombine.low %v1069_v56, %v4079_v5  ;;  %v2611_v5 = vcombine.low %v4074_v1, %v4074_v1 }
 0x21e   : > { %1291 = vrot.lane.b32.xlu0 %v1254_v8, %s3432_s7  ;;  %1384 = vrot.lane.b32.xlu1 %v1348_v9, %s3431_s29 }
 0x222   : > { %1386 = vrot.lane.b32.xlu0 %v1350_v15, %s3431_s29  ;;  %1297 = vrot.lane.b32.xlu1 %v1278_v14, %s3432_s7 }
 0x226   : > { %1398 = vrot.lane.b32.xlu1 %v1359_v18, %s3431_s29  ;;  %1396 = vrot.lane.b32.xlu0 %v1357_v16, %s3431_s29  ;;  %s3264_s29 = scalar_lea.vmem %s4459_s0, 1024 }
 0x227   : > { %p3265_p0 = scmp.ne.s32.totalorder %s4459_s0, %s3264_s29 }
 0x229   : > { %p3266_p6 = pnand %p3265_p0, %p4653_p11 }
 0x22b   : > { %p3267_p7 = pneg %p3266_p6 }
 0x25f   : > { %v1393_v22 = vpop.permute.xlu0 %1392 }
 0x260   : > { %v1389_v23 = vpop.permute.xlu1 %1388 }
 0x264   : > { %v1391_v32 = vpop.permute.xlu1 %1390  ;;  %v1294_v33 = vpop.permute.xlu0 %1293 }
 0x265   : > { %v1438_v34 = vsel %vm1400_vm10, %v2622_v28, %v1294_v33  ;;  %v1440_v35 = vsel %vm1400_vm10, %v2623_v27, %v1294_v33 }
 0x266   : > { %v1481_v36 = vsel %vm1451_vm11, %v1438_v34, %v1389_v23  ;;  %v1483_v37 = vsel %vm1451_vm11, %v1440_v35, %v1391_v32 }
 0x267   : > { %v1598_v43 = vshrl.u32 %v1481_v36, 16  ;;  %v1601_v41 = vshll.u32 %v1481_v36, 16  ;;  %v1605_v46 = vshrl.u32 %v1483_v37, 16  ;;  %v1608_v47 = vshll.u32 %v1483_v37, 16 }
 0x268   : > { %v1395_v57 = vpop.permute.xlu1 %1394  ;;  %v1296_v59 = vpop.permute.xlu0 %1295 }
 0x269   : > { %v1600_v2 = vrot.slane %v1598_v43, 3  ;;  %v1603_v3 = vrot.slane %v1601_v41, 4  ;;  %v1607_v4 = vrot.slane %v1605_v46, 3  ;;  %v1610_v7 = vrot.slane %v1608_v47, 4  ;;  %v3145_v47 = vld [vmem:[%s4643_s12 + $0x10] sm:$0x3f]  }
 0x26a   : > { %v1443_v8 = vsel %vm1400_vm10, %v2624_v40, %v1296_v59  ;;  %v1445_v38 = vsel %vm1400_vm10, %v2625_v42, %v1296_v59 }
 0x26b   : > { %v1485_v9 = vsel %vm1451_vm11, %v1443_v8, %v1393_v22  ;;  %v1487_v10 = vsel %vm1451_vm11, %v1445_v38, %v1395_v57  ;;  %v1604_v63 = vor.u32 %v1603_v3, %v1600_v2  ;;  %v1611_v11 = vor.u32 %v1610_v7, %v1607_v4 }
 0x26c   : > { %v1615_v13 = vshrl.u32 %v1485_v9, 16  ;;  %v1618_v14 = vshll.u32 %v1485_v9, 16  ;;  %v1622_v6 = vshrl.u32 %v1487_v10, 16  ;;  %v1625_v15 = vshll.u32 %v1487_v10, 16  ;;  %v1282_v16 = vpop.permute.xlu1 %1281  ;;  %v1280_v18 = vpop.permute.xlu0 %1279 }
 0x26d   : > { %v2610_v22 = vcombine.low %v1072_v17, %v4071_v62  ;;  %v4203_v29 = vsel %vm1492_vm12, %v1604_v63, %v1611_v11  ;;  %v1403_v34 = vsel %vm1400_vm10, %v2608_v39, %v1280_v18  ;;  %v1405_v35 = vsel %vm1400_vm10, %v2609_v0, %v1280_v18  ;;  %v1075_v39 = vld [vmem:[#allocation2 + $0x2c] sm:$0x8]  ;;  %v1078_v17 = vld [vmem:[#allocation2 + $0x40] sm:$0x8] }
 0x26e   : > { %v1617_v21 = vrot.slane %v1615_v13, 3  ;;  %v1620_v23 = vrot.slane %v1618_v14, 4  ;;  %v1624_v27 = vrot.slane %v1622_v6, 3  ;;  %v1627_v28 = vrot.slane %v1625_v15, 4  ;;  %2838 = vmatprep.mubr.msk.bf16.mxu1 %vm1638_vm13, %v4203_v29 }
 0x26f   : > { %v1773_v62 = vsel %vm1663_vm9, %v4144_v19, 0  ;;  %v1408_v56 = vsel %vm1400_vm10, %v2610_v22, %v1282_v16  ;;  %v1410_v57 = vsel %vm1400_vm10, %v2611_v5, %v1282_v16  ;;  %v2613_v6 = vcombine.low %v4095_v26, %v4095_v26 }
 0x270   : > { %v1621_v32 = vor.u32 %v1620_v23, %v1617_v21  ;;  %v1628_v33 = vor.u32 %v1627_v28, %v1624_v27  ;;  %v1363_v36 = vpop.permute.xlu1 %1362  ;;  %v1361_v37 = vpop.permute.xlu0 %1360  ;;  %v2612_v21 = vcombine.low %v1075_v39, %v4093_v25 }
 0x271   : > { %v1455_v40 = vsel %vm1451_vm11, %v1405_v35, %v1363_v36  ;;  %v1453_v1 = vsel %vm1451_vm11, %v1403_v34, %v1361_v37  ;;  %v1899_v37 = vsel %vm1663_vm9, %v3145_v47, 0 }
 0x272   : > { %v1500_v42 = vshrl.u32 %v1455_v40, 16  ;;  %v1503_v43 = vshll.u32 %v1455_v40, 16  ;;  %v1493_v41 = vshrl.u32 %v1453_v1, 16  ;;  %v1496_v46 = vshll.u32 %v1453_v1, 16 }
 0x273   : > { %v4219_v59 = vsel %vm1492_vm12, %v1621_v32, %v1628_v33  ;;  %v2614_v32 = vcombine.low %v1078_v17, %v4088_v20  ;;  %v2615_v33 = vcombine.low %v4091_v24, %v4091_v24 }
 0x274   : > { %v1502_v0 = vrot.slane %v1500_v42, 3  ;;  %v1505_v2 = vrot.slane %v1503_v43, 4  ;;  %v1495_v3 = vrot.slane %v1493_v41, 3  ;;  %v1498_v4 = vrot.slane %v1496_v46, 4  ;;  %2839 = vmatmul.mubr.msk.bf16.vlgmr.msra.gmra.mrb[4].mxu1 %vm1638_vm13, %v4219_v59  ;;  %v1367_v19 = vpop.permute.xlu1 %1366  ;;  %v1365_v7 = vpop.permute.xlu0 %1364 }
 0x275   : > { %v1459_v8 = vsel %vm1451_vm11, %v1410_v57, %v1367_v19  ;;  %v1457_v38 = vsel %vm1451_vm11, %v1408_v56, %v1365_v7  ;;  %2843 = vmatpush3.bf16.msra.mxu1 %v1773_v62  ;;  %v1081_v7 = vld [vmem:[#allocation2 + $0x54] sm:$0x8] }
 0x276   : > { %v1506_v9 = vor.u32 %v1505_v2, %v1502_v0  ;;  %v1499_v10 = vor.u32 %v1498_v4, %v1495_v3  ;;  %v1515_v63 = vshrl.u32 %v1459_v8, 16  ;;  %v1518_v11 = vshll.u32 %v1459_v8, 16  ;;  %2933 = vmatprep.subr.msk.bf16.mxu1 %vm1663_vm9, %v3145_v47 }
 0x277   : > { %v1508_v13 = vshrl.u32 %v1457_v38, 16  ;;  %v1511_v14 = vshll.u32 %v1457_v38, 16 }
 0x278   : > { %v1517_v15 = vrot.slane %v1515_v63, 3  ;;  %v1520_v16 = vrot.slane %v1518_v11, 4  ;;  %v1286_v18 = vpop.permute.xlu1 %1285  ;;  %v1284_v23 = vpop.permute.xlu0 %1283  ;;  %v1507_v27 = vsel %vm1492_vm12, %v1499_v10, %v1506_v9  ;;  %v2617_v11 = vcombine.low %v4119_v61, %v4119_v61 }
 0x279   : > { %v1510_v28 = vrot.slane %v1508_v13, 3  ;;  %v1513_v5 = vrot.slane %v1511_v14, 4  ;;  %2844 = vmatprep.mubr.msk.bf16.mxu1 %vm1638_vm13, %v1507_v27  ;;  %v1413_v34 = vsel %vm1400_vm10, %v2612_v21, %v1284_v23  ;;  %v1415_v35 = vsel %vm1400_vm10, %v2613_v6, %v1284_v23  ;;  %v1084_v6 = vld [vmem:[#allocation2 + $0x68] sm:$0x8] }
 0x27a   : > { %v1521_v22 = vor.u32 %v1520_v16, %v1517_v15  ;;  %v1418_v24 = vsel %vm1400_vm10, %v2614_v32, %v1286_v18  ;;  %v1420_v46 = vsel %vm1400_vm10, %v2615_v33, %v1286_v18  ;;  %v2616_v16 = vcombine.low %v1081_v7, %v4117_v60  ;;  %v1096_v7 = vld [vmem:[#allocation2 + $0xb8] sm:$0x8] }
 0x27b   : > { %v1514_v26 = vor.u32 %v1513_v5, %v1510_v28  ;;  %v2618_v28 = vcombine.low %v1084_v6, %v4110_v55  ;;  %v2619_v5 = vcombine.low %v4114_v58, %v4114_v58  ;;  %v1087_v58 = vld [vmem:[#allocation2 + $0x7c] sm:$0x8] }
 0x27c   : > { %v1371_v36 = vpop.permute.xlu1 %1370  ;;  %v1369_v25 = vpop.permute.xlu0 %1368 }
 0x27d   : > { %v1463_v40 = vsel %vm1451_vm11, %v1415_v35, %v1371_v36  ;;  %v1461_v1 = vsel %vm1451_vm11, %v1413_v34, %v1369_v25  ;;  %v1522_v62 = vsel %vm1492_vm12, %v1514_v26, %v1521_v22 }
 0x27e   : > { %v1530_v42 = vshrl.u32 %v1463_v40, 16  ;;  %v1533_v20 = vshll.u32 %v1463_v40, 16  ;;  %v1523_v43 = vshrl.u32 %v1461_v1, 16  ;;  %v1526_v41 = vshll.u32 %v1461_v1, 16  ;;  %2826 = vmatprep.mubr.msk.bf16.mxu0 %vm1638_vm13, %v1522_v62  ;;  %2845 = vmatmul.mubr.msk.bf16.vlgmr.msra.gmra.mrb[8].mxu1 %vm1638_vm13, %v1522_v62 }
 0x27f   : > { %2861 = vmatpush3.bf16.msra.mxu1 %v1899_v37 }
 0x280   : > { %v1532_v47 = vrot.slane %v1530_v42, 3  ;;  %v1535_v56 = vrot.slane %v1533_v20, 4  ;;  %v1525_v57 = vrot.slane %v1523_v43, 3  ;;  %v1528_v0 = vrot.slane %v1526_v41, 4  ;;  %v1375_v2 = vpop.permute.xlu1 %1374  ;;  %v1373_v3 = vpop.permute.xlu0 %1372 }
 0x281   : > { %v1467_v4 = vsel %vm1451_vm11, %v1420_v46, %v1375_v2  ;;  %v1465_v19 = vsel %vm1451_vm11, %v1418_v24, %v1373_v3 }
 0x282   : > { %v1536_v8 = vor.u32 %v1535_v56, %v1532_v47  ;;  %v1529_v38 = vor.u32 %v1528_v0, %v1525_v57  ;;  %v1545_v39 = vshrl.u32 %v1467_v4, 16  ;;  %v1548_v9 = vshll.u32 %v1467_v4, 16 }
 0x283   : > { %v1538_v10 = vshrl.u32 %v1465_v19, 16  ;;  %v1541_v63 = vshll.u32 %v1465_v19, 16  ;;  %v2620_v56 = vcombine.low %v1087_v58, %v4149_v30 }
 0x284   : > { %v1547_v13 = vrot.slane %v1545_v39, 3  ;;  %v1550_v14 = vrot.slane %v1548_v9, 4  ;;  %v1290_v15 = vpop.permute.xlu1 %1289  ;;  %v1288_v17 = vpop.permute.xlu0 %1287  ;;  %v4250_v18 = vsel %vm1492_vm12, %v1529_v38, %v1536_v8  ;;  %v2621_v39 = vcombine.low %v4151_v31, %v4151_v31 }
 0x285   : > { %v1540_v21 = vrot.slane %v1538_v10, 3  ;;  %v1543_v23 = vrot.slane %v1541_v63, 4  ;;  %2827 = vmatmul.mubr.msk.bf16.vlgmr.msra.gmra.mrb[16].mxu0 %vm1638_vm13, %v4250_v18  ;;  %2848 = vmatprep.mubr.msk.bf16.mxu1 %vm1638_vm13, %v4250_v18  ;;  %v1423_v60 = vsel %vm1400_vm10, %v2616_v16, %v1288_v17  ;;  %v1425_v22 = vsel %vm1400_vm10, %v2617_v11, %v1288_v17 }
 0x286   : > { %v1551_v27 = vor.u32 %v1550_v14, %v1547_v13  ;;  %v1428_v40 = vsel %vm1400_vm10, %v2618_v28, %v1290_v15  ;;  %v1430_v1 = vsel %vm1400_vm10, %v2619_v5, %v1290_v15  ;;  %v2626_v15 = vcombine.low %v1096_v7, %v4159_v53 }
 0x287   : > { %v1544_v61 = vor.u32 %v1543_v23, %v1540_v21  ;;  %v2627_v31 = vcombine.low %v4161_v54, %v4161_v54 }
 0x288   : > { %v1379_v32 = vpop.permute.xlu1 %1378  ;;  %v1377_v33 = vpop.permute.xlu0 %1376 }
 0x289   : > { %v1471_v26 = vsel %vm1451_vm11, %v1425_v22, %v1379_v32  ;;  %v1469_v34 = vsel %vm1451_vm11, %v1423_v60, %v1377_v33  ;;  %v4264_v35 = vsel %vm1492_vm12, %v1544_v61, %v1551_v27 }
 0x28a   : > { %v1560_v36 = vshrl.u32 %v1471_v26, 16  ;;  %v1563_v25 = vshll.u32 %v1471_v26, 16  ;;  %v1553_v37 = vshrl.u32 %v1469_v34, 16  ;;  %v1556_v55 = vshll.u32 %v1469_v34, 16  ;;  %2830 = vmatprep.mubr.msk.bf16.mxu0 %vm1638_vm13, %v4264_v35  ;;  %2849 = vmatmul.mubr.msk.bf16.gmra.mrb[12].mxu1 %vm1638_vm13, %v4264_v35 }
 0x28c   : > { %v1562_v62 = vrot.slane %v1560_v36, 3  ;;  %v1565_v42 = vrot.slane %v1563_v25, 4  ;;  %v1555_v20 = vrot.slane %v1553_v37, 3  ;;  %v1558_v43 = vrot.slane %v1556_v55, 4  ;;  %v1383_v41 = vpop.permute.xlu1 %1382  ;;  %v1381_v24 = vpop.permute.xlu0 %1380 }
 0x28d   : > { %v1475_v46 = vsel %vm1451_vm11, %v1430_v1, %v1383_v41  ;;  %v1473_v47 = vsel %vm1451_vm11, %v1428_v40, %v1381_v24 }
 0x28e   : > { %v1566_v57 = vor.u32 %v1565_v42, %v1562_v62  ;;  %v1559_v0 = vor.u32 %v1558_v43, %v1555_v20  ;;  %v1575_v2 = vshrl.u32 %v1475_v46, 16  ;;  %v1578_v3 = vshll.u32 %v1475_v46, 16 }
 0x28f   : > { %v1568_v4 = vshrl.u32 %v1473_v47, 16  ;;  %v1571_v19 = vshll.u32 %v1473_v47, 16 }
 0x290   : > { %v1577_v8 = vrot.slane %v1575_v2, 3  ;;  %v1580_v38 = vrot.slane %v1578_v3, 4  ;;  %v1292_v9 = vpop.permute.xlu0 %1291  ;;  %v1385_v10 = vpop.permute.xlu1 %1384  ;;  %v1567_v63 = vsel %vm1492_vm12, %v1559_v0, %v1566_v57 }
 0x291   : > { %v1570_v11 = vrot.slane %v1568_v4, 3  ;;  %v1573_v13 = vrot.slane %v1571_v19, 4  ;;  %v1433_v30 = vsel %vm1400_vm10, %v2620_v56, %v1292_v9  ;;  %2831 = vmatmul.mubr.msk.bf16.gmra.mrb[20].mxu0 %vm1638_vm13, %v1567_v63  ;;  %2852 = vmatprep.mubr.msk.bf16.mxu1 %vm1638_vm13, %v1567_v63  ;;  %v1435_v23 = vsel %vm1400_vm10, %v2621_v39, %v1292_v9 }
 0x292   : > { %v1581_v14 = vor.u32 %v1580_v38, %v1577_v8  ;;  %v1477_v6 = vsel %vm1451_vm11, %v1433_v30, %v1385_v10 }
 0x293   : > { %v1574_v16 = vor.u32 %v1573_v13, %v1570_v11  ;;  %v1583_v17 = vshrl.u32 %v1477_v6, 16  ;;  %v1586_v21 = vshll.u32 %v1477_v6, 16  ;;  %v4318_v11 = vld [vmem:[%s4645_s21] ss:$0 sm:$0xff] }
 0x294   : > { %v1387_v27 = vpop.permute.xlu0 %1386  ;;  %v1298_v61 = vpop.permute.xlu1 %1297 }
 0x295   : > { %v1585_v28 = vrot.slane %v1583_v17, 3  ;;  %v1588_v5 = vrot.slane %v1586_v21, 4  ;;  %v1479_v60 = vsel %vm1451_vm11, %v1435_v23, %v1387_v27  ;;  %v1582_v22 = vsel %vm1492_vm12, %v1574_v16, %v1581_v14  ;;  %v4323_v14 = vld [vmem:[%s4646_s26] ss:$0 sm:$0xff] }
 0x296   : > { %v1590_v32 = vshrl.u32 %v1479_v60, 16  ;;  %v1593_v33 = vshll.u32 %v1479_v60, 16  ;;  %2834 = vmatprep.mubr.msk.bf16.mxu0 %vm1638_vm13, %v1582_v22  ;;  %2853 = vmatmul.mubr.msk.bf16.gmra.mrb[16].mxu1 %vm1638_vm13, %v1582_v22  ;;  %v1448_v53 = vsel %vm1400_vm10, %v2626_v15, %v1298_v61  ;;  %v1450_v54 = vsel %vm1400_vm10, %v2627_v31, %v1298_v61 }
 0x297   : > { %v1589_v37 = vor.u32 %v1588_v5, %v1585_v28 }
 0x298   : > { %v1592_v26 = vrot.slane %v1590_v32, 3  ;;  %v1595_v34 = vrot.slane %v1593_v33, 4  ;;  %v1399_v36 = vpop.permute.xlu1 %1398  ;;  %v1397_v25 = vpop.permute.xlu0 %1396 }
 0x299   : > { %v1491_v55 = vsel %vm1451_vm11, %v1450_v54, %v1399_v36  ;;  %v1489_v58 = vsel %vm1451_vm11, %v1448_v53, %v1397_v25 }
 0x29a   : > { %v1596_v40 = vor.u32 %v1595_v34, %v1592_v26  ;;  %v1879_v1 = vshrl.u32 %v1491_v55, 16  ;;  %v1882_v62 = vshll.u32 %v1491_v55, 16  ;;  %v1872_v42 = vshrl.u32 %v1489_v58, 16 }
 0x29b   : > { %v1875_v20 = vshll.u32 %v1489_v58, 16 }
 0x29c   : > { %v1597_v43 = vsel %vm1492_vm12, %v1589_v37, %v1596_v40  ;;  %v1881_v41 = vrot.slane %v1879_v1, 3  ;;  %v1884_v24 = vrot.slane %v1882_v62, 4  ;;  %v1874_v46 = vrot.slane %v1872_v42, 3 }
 0x29d   : > { %2835 = vmatmul.mubr.msk.bf16.gmra.mrb[24].mxu0 %vm1638_vm13, %v1597_v43  ;;  %2856 = vmatprep.mubr.msk.bf16.mxu1 %vm1638_vm13, %v1597_v43  ;;  %v1877_v47 = vrot.slane %v1875_v20, 4 }
 0x29e   : > { %2857 = vmatmul.mubr.msk.bf16.gmra.mrb[4].mxu1 %vm1638_vm13, %v4203_v29  ;;  %v1885_v56 = vor.u32 %v1884_v24, %v1881_v41 }
 0x29f   : > { %2862 = vmatprep.mubr.msk.bf16.mxu1 %vm1638_vm13, %v4250_v18  ;;  %v1878_v57 = vor.u32 %v1877_v47, %v1874_v46  ;;  %v2084_v18 = vld [vmem:[%s4644_s2] sm:$0x3]  ;;  %s2711_s2 = sshll.u32 %s2399_s10, 6 }
 0x2a0   : > { %2934 = vmatprep.subr.msk.bf16.mxu0 %vm2109_vm14, %v2084_v18  ;;  %s4455_s26 = scalar_lea.hbm %s4651_s17, %s2711_s2 }
 0x2a1   : > { %v1886_v0 = vsel %vm1492_vm12, %v1878_v57, %v1885_v56 }
 0x2a6   : > { %2863 = vmatmul.mubr.msk.bf16.vlgmr.msra.gmra.mrb[8].mxu1 %vm1638_vm13, %v4264_v35  ;;  %v2111_v35 = vsel %vm2109_vm14, %v2084_v18, 0 }
 0x2a7   : > { %2866 = vmatprep.mubr.msk.bf16.mxu1 %vm1638_vm13, %v1567_v63  ;;  %2879 = vmatpush3.bf16.msra.mxu0 %v2111_v35 }
 0x2ae   : > { %2867 = vmatmul.mubr.msk.bf16.gmra.mrb[12].mxu1 %vm1638_vm13, %v1582_v22 }
 0x2af   : > { %2870 = vmatprep.mubr.msk.bf16.mxu1 %vm1638_vm13, %v1597_v43 }
 0x2b6   : > { %2871 = vmatmul.mubr.msk.bf16.gmra.mrb[16].mxu1 %vm1638_vm13, %v4203_v29 }
 0x2b7   : > { %2874 = vmatprep.mubr.msk.bf16.mxu1 %vm1638_vm13, %v4219_v59 }
 0x2be   : > { %2875 = vmatmul.mubr.msk.bf16.gmra.mrb[4].mxu1 %vm1638_vm13, %v1886_v0 }
 0x358   : > { %v2828_v2 = vpop.f32.mrb[16].mxu0 }
 0x359   : > { %v1701_v3 = vpop.f32.mrb[17].mxu0 }
 0x35a   : > { %v2829_v4 = vpop.f32.mrb[18].mxu0 }
 0x35b   : > { %v1704_v19 = vpop.f32.mrb[19].mxu0 }
 0x364   : > { %v2832_v7 = vpop.f32.mrb[20].mxu0 }
 0x365   : > { %v1717_v8 = vpop.f32.mrb[21].mxu0 }
 0x366   : > { %v2833_v29 = vpop.f32.mrb[22].mxu0 }
 0x367   : > { %v1720_v38 = vpop.f32.mrb[23].mxu0 }
 0x370   : > { %v2836_v39 = vpop.f32.mrb[24].mxu0 }
 0x371   : > { %v1733_v59 = vpop.f32.mrb[25].mxu0 }
 0x372   : > { %v2837_v9 = vpop.f32.mrb[26].mxu0 }
 0x373   : > { %v1736_v10 = vpop.f32.mrb[27].mxu0 }
 0x379   : > { %v2864_v63 = vpop.f32.mrb[8].mxu1 }
 0x37a   : > { %v2898_v13 = vadd.f32 %v2864_v63, %v2828_v2  ;;  %v1935_v30 = vpop.f32.mrb[9].mxu1 }
 0x37b   : > { %v2899_v6 = vadd.f32 %v1935_v30, %v1701_v3  ;;  %v2865_v15 = vpop.f32.mrb[10].mxu1 }
 0x37c   : > { %v2023_v31 = vmul.f32 %v2898_v13, %v4318_v11  ;;  %v2900_v16 = vadd.f32 %v2865_v15, %v2829_v4  ;;  %v1938_v17 = vpop.f32.mrb[11].mxu1 }
 0x37d   : > { %v2021_v21 = vmul.f32 %v2899_v6, %v4318_v11  ;;  %v2901_v23 = vadd.f32 %v1938_v17, %v1704_v19 }
 0x37e   : > { %v2046_v27 = vadd.f32 %v4323_v14, %v2023_v31  ;;  %v2024_v61 = vmul.f32 %v2900_v16, %v4318_v11 }
 0x37f   : > { %v2044_v28 = vadd.f32 %v4323_v14, %v2021_v21  ;;  %v2022_v5 = vmul.f32 %v2901_v23, %v4318_v11 }
 0x380   : > { %v2047_v60 = vadd.f32 %v4323_v14, %v2024_v61  ;;  %v2062_v33 = vmax.f32 %v2046_v27, 0.0 }
 0x381   : > { %v2045_v22 = vadd.f32 %v4323_v14, %v2022_v5  ;;  %v2868_v32 = vpop.f32.mrb[12].mxu1  ;;  %v2060_v34 = vmax.f32 %v2044_v28, 0.0 }
 0x382   : > { %v2063_v53 = vmax.f32 %v2047_v60, 0.0  ;;  %v2902_v54 = vadd.f32 %v2868_v32, %v2832_v7  ;;  %v1951_v26 = vpop.f32.mrb[13].mxu1 }
 0x383   : > { %v2061_v36 = vmax.f32 %v2045_v22, 0.0  ;;  %v2903_v25 = vadd.f32 %v1951_v26, %v1717_v8  ;;  %v2869_v37 = vpop.f32.mrb[14].mxu1 }
 0x384   : > { %v2077_v55 = vpack.c.bf16 %v2063_v53, %v2062_v33  ;;  %v2027_v58 = vmul.f32 %v2902_v54, %v4318_v11  ;;  %v2904_v40 = vadd.f32 %v2869_v37, %v2833_v29  ;;  %v1954_v1 = vpop.f32.mrb[15].mxu1 }
 0x385   : > { %v2076_v62 = vpack.c.bf16 %v2061_v36, %v2060_v34  ;;  %v2025_v42 = vmul.f32 %v2903_v25, %v4318_v11  ;;  %v2905_v20 = vadd.f32 %v1954_v1, %v1720_v38 }
 0x386   : > { %v2050_v43 = vadd.f32 %v4323_v14, %v2027_v58  ;;  %v2028_v41 = vmul.f32 %v2904_v40, %v4318_v11 }
 0x387   : > { %v2048_v24 = vadd.f32 %v4323_v14, %v2025_v42  ;;  %v2026_v46 = vmul.f32 %v2905_v20, %v4318_v11  ;;  %2880 = vmatprep.mubr.msk.bf16.mxu0 %vm1400_vm10, %v2076_v62  ;;  %v4373_v42 = vld [vmem:[%s4648_s24] ss:$0 sm:$0xff] }
 0x388   : > { %v2051_v47 = vadd.f32 %v4323_v14, %v2028_v41  ;;  %2881 = vmatmul.mubr.msk.bf16.vlgmr.msra.gmra.mrb[28].mxu0 %vm1400_vm10, %v2077_v55  ;;  %v2066_v0 = vmax.f32 %v2050_v43, 0.0  ;;  %v2258_v43 = vunpack.c.l.bf16 %v3939_v44 }
 0x389   : > { %v2049_v56 = vadd.f32 %v4323_v14, %v2026_v46  ;;  %v2872_v57 = vpop.f32.mrb[16].mxu1  ;;  %v2064_v3 = vmax.f32 %v2048_v24, 0.0  ;;  %v2256_v46 = vunpack.c.l.bf16 %v3896_v12 }
 0x38a   : > { %v2067_v18 = vmax.f32 %v2051_v47, 0.0  ;;  %v2906_v35 = vadd.f32 %v2872_v57, %v2836_v39  ;;  %v1967_v2 = vpop.f32.mrb[17].mxu1 }
 0x38b   : > { %v2065_v4 = vmax.f32 %v2049_v56, 0.0  ;;  %v2907_v19 = vadd.f32 %v1967_v2, %v1733_v59  ;;  %v2873_v7 = vpop.f32.mrb[18].mxu1 }
 0x38c   : > { %v2079_v8 = vpack.c.bf16 %v2067_v18, %v2066_v0  ;;  %v2031_v29 = vmul.f32 %v2906_v35, %v4318_v11  ;;  %v2908_v38 = vadd.f32 %v2873_v7, %v2837_v9  ;;  %v1970_v63 = vpop.f32.mrb[19].mxu1  ;;  %v2259_v0 = vunpack.c.h.bf16 %v3939_v44 }
 0x38d   : > { %v2078_v13 = vpack.c.bf16 %v2065_v4, %v2064_v3  ;;  %v2029_v30 = vmul.f32 %v2907_v19, %v4318_v11  ;;  %v2909_v6 = vadd.f32 %v1970_v63, %v1736_v10  ;;  %v2257_v3 = vunpack.c.h.bf16 %v3896_v12 }
 0x38e   : > { %v2054_v15 = vadd.f32 %v4323_v14, %v2031_v29  ;;  %v2032_v31 = vmul.f32 %v2908_v38, %v4318_v11  ;;  %v2262_v12 = vunpack.c.l.bf16 %v3953_v48 }
 0x38f   : > { %v2052_v39 = vadd.f32 %v4323_v14, %v2029_v30  ;;  %v2030_v16 = vmul.f32 %v2909_v6, %v4318_v11  ;;  %2884 = vmatprep.mubr.msk.bf16.mxu0 %vm1400_vm10, %v2078_v13 }
 0x390   : > { %v2055_v59 = vadd.f32 %v4323_v14, %v2032_v31  ;;  %2885 = vmatmul.mubr.msk.bf16.gmra.mrb[32].mxu0 %vm1400_vm10, %v2079_v8  ;;  %v2070_v21 = vmax.f32 %v2054_v15, 0.0 }
 0x391   : > { %v2053_v9 = vadd.f32 %v4323_v14, %v2030_v16  ;;  %v2876_v17 = vpop.f32.mrb[4].mxu1  ;;  %v2068_v61 = vmax.f32 %v2052_v39, 0.0 }
 0x392   : > { %v2071_v23 = vmax.f32 %v2055_v59, 0.0  ;;  %v2035_v10 = vmul.f32 %v2876_v17, %v4318_v11  ;;  %v1983_v27 = vpop.f32.mrb[5].mxu1 }
 0x393   : > { %v2069_v28 = vmax.f32 %v2053_v9, 0.0  ;;  %v2033_v5 = vmul.f32 %v4318_v11, %v1983_v27  ;;  %v2877_v60 = vpop.f32.mrb[6].mxu1  ;;  %v2260_v9 = vunpack.c.l.bf16 %v3942_v45  ;;  %v2263_v27 = vunpack.c.h.bf16 %v3953_v48 }
 0x394   : > { %v2081_v22 = vpack.c.bf16 %v2071_v23, %v2070_v21  ;;  %v2058_v32 = vadd.f32 %v4323_v14, %v2035_v10  ;;  %v2036_v33 = vmul.f32 %v2877_v60, %v4318_v11  ;;  %v1986_v53 = vpop.f32.mrb[7].mxu1 }
 0x395   : > { %v2080_v54 = vpack.c.bf16 %v2069_v28, %v2068_v61  ;;  %v2056_v26 = vadd.f32 %v4323_v14, %v2033_v5  ;;  %v2034_v34 = vmul.f32 %v4318_v11, %v1986_v53  ;;  %v4368_v11 = vld [vmem:[%s4647_s5] ss:$0 sm:$0xff]  ;;  %s3433_s5 = smov [#allocation12]  }
 0x396   : > { %v2059_v36 = vadd.f32 %v4323_v14, %v2036_v33  ;;  %v2074_v37 = vmax.f32 %v2058_v32, 0.0  ;;  %s3268_s13 = sshll.u32 %s3433_s5, 4  ;;  %s3269_s13 = int_to_ptr.vmem [resolvable:$false] %s3268_s13 }
 0x397   : > { %v2057_v25 = vadd.f32 %v4323_v14, %v2034_v34  ;;  %2888 = vmatprep.mubr.msk.bf16.mxu0 %vm1400_vm10, %v2080_v54  ;;  %v2072_v58 = vmax.f32 %v2056_v26, 0.0  ;;  %s3270_s30 = scalar_lea.vmem %s3269_s13, 2048  ;;  %p3271_p1 = scmp.lt.s32.totalorder %s4459_s0, %s3269_s13 }
 0x398   : > { %v2075_v55 = vmax.f32 %v2059_v36, 0.0  ;;  %2889 = vmatmul.mubr.msk.bf16.gmra.mrb[36].mxu0 %vm1400_vm10, %v2081_v22  ;;  %v2261_v22 = vunpack.c.h.bf16 %v3942_v45  ;;  %p3272_p2 = scmp.lt.s32.totalorder %s3270_s30, %s3264_s29 }
 0x399   : > { %v2073_v40 = vmax.f32 %v2057_v25, 0.0 }
 0x39a   : > { %v2083_v1 = vpack.c.bf16 %v2075_v55, %v2074_v37  ;;  %p3273_p9 = por %p3272_p2, %p3271_p1 }
 0x39b   : > { %v2082_v62 = vpack.c.bf16 %v2073_v40, %v2072_v58  ;;  %v2266_v58 = vunpack.c.l.bf16 %v3965_v50 }
 0x39c   : > { %p3274_p12 = pnand %p3273_p9, %p3267_p7 }
 0x39d   : > { %2892 = vmatprep.mubr.msk.bf16.mxu0 %vm1400_vm10, %v2082_v62 }
 0x3a0   : > { %2893 = vmatmul.mubr.msk.bf16.gmra.mrb[40].mxu0 %vm1400_vm10, %v2083_v1 }
 0x45b   : > { %v2882_v14 = vpop.f32.mrb[28].mxu0 }
 0x45c   : > { %v2219_v20 = vmul.f32 %v2882_v14, %v4368_v11  ;;  %v2147_v41 = vpop.f32.mrb[29].mxu0 }
 0x45d   : > { %v2217_v24 = vmul.f32 %v4368_v11, %v2147_v41  ;;  %v2883_v47 = vpop.f32.mrb[30].mxu0 }
 0x45e   : > { %v2242_v56 = vadd.f32 %v4373_v42, %v2219_v20  ;;  %v2220_v57 = vmul.f32 %v2883_v47, %v4368_v11  ;;  %v2150_v18 = vpop.f32.mrb[31].mxu0  ;;  %v2264_v20 = vunpack.c.l.bf16 %v3957_v49  ;;  %v2267_v47 = vunpack.c.h.bf16 %v3965_v50 }
 0x45f   : > { %v2240_v35 = vadd.f32 %v4373_v42, %v2217_v24  ;;  %v2218_v2 = vmul.f32 %v4368_v11, %v2150_v18 }
 0x460   : > { %v2274_v4 = vadd.f32 %v2258_v43, %v2242_v56  ;;  %v2243_v19 = vadd.f32 %v4373_v42, %v2220_v57 }
 0x461   : > { %v2272_v7 = vadd.f32 %v2256_v46, %v2240_v35  ;;  %v2241_v8 = vadd.f32 %v4373_v42, %v2218_v2  ;;  %v2265_v35 = vunpack.c.h.bf16 %v3957_v49 }
 0x462   : > { %v2290_v29 = vmax.f32 %v2274_v4, 0.0  ;;  %v2275_v38 = vadd.f32 %v2259_v0, %v2243_v19 }
 0x463   : > { %v2288_v63 = vmax.f32 %v2272_v7, 0.0  ;;  %v2273_v13 = vadd.f32 %v2257_v3, %v2241_v8  ;;  %v2886_v44 = vpop.f32.mrb[32].mxu0 }
 0x464   : > { %v2737_v30 = vpack.c.bf16 %v2290_v29, %v2290_v29  ;;  %v2291_v6 = vmax.f32 %v2275_v38, 0.0  ;;  %v2223_v15 = vmul.f32 %v2886_v44, %v4368_v11  ;;  %v2163_v31 = vpop.f32.mrb[33].mxu0  ;;  %v2270_v44 = vunpack.c.l.bf16 %v3975_v52 }
 0x465   : > { %v2735_v39 = vpack.c.bf16 %v2288_v63, %v2288_v63  ;;  %v2289_v16 = vmax.f32 %v2273_v13, 0.0  ;;  %v2221_v59 = vmul.f32 %v4368_v11, %v2163_v31  ;;  %v2887_v17 = vpop.f32.mrb[34].mxu0  ;;  %v2268_v31 = vunpack.c.l.bf16 %v3968_v51 }
 0x466   : > { %2371 = vst.msk [vmem:[%s4051_s3 + $0x8] sm:$0xf] %vm2368_vm15, %v2737_v30  ;;  %v2738_v21 = vpack.c.bf16 %v2291_v6, %v2291_v6  ;;  %v2246_v23 = vadd.f32 %v4373_v42, %v2223_v15  ;;  %v2224_v10 = vmul.f32 %v2887_v17, %v4368_v11  ;;  %v2166_v61 = vpop.f32.mrb[35].mxu0  ;;  %v2271_v17 = vunpack.c.h.bf16 %v3975_v52 }
 0x467   : > { %2369 = vst.msk [vmem:[%s4051_s3] sm:$0xf] %vm2368_vm15, %v2735_v39  ;;  %v2736_v28 = vpack.c.bf16 %v2289_v16, %v2289_v16  ;;  %v2244_v5 = vadd.f32 %v4373_v42, %v2221_v59  ;;  %v2222_v60 = vmul.f32 %v4368_v11, %v2166_v61  ;;  %v2269_v61 = vunpack.c.h.bf16 %v3968_v51 }
 0x468   : > { %2372 = vst.msk [vmem:[%s4051_s3 + $0xc] sm:$0xf] %vm2368_vm15, %v2738_v21  ;;  %v2278_v32 = vadd.f32 %v2262_v12, %v2246_v23  ;;  %v2247_v33 = vadd.f32 %v4373_v42, %v2224_v10 }
 0x469   : > { %2370 = vst.msk [vmem:[%s4051_s3 + $0x4] sm:$0xf] %vm2368_vm15, %v2736_v28  ;;  %v2276_v53 = vadd.f32 %v2260_v9, %v2244_v5  ;;  %v2245_v48 = vadd.f32 %v4373_v42, %v2222_v60 }
 0x46a   : > { %v2294_v54 = vmax.f32 %v2278_v32, 0.0  ;;  %v2279_v26 = vadd.f32 %v2263_v27, %v2247_v33 }
 0x46b   : > { %v2292_v34 = vmax.f32 %v2276_v53, 0.0  ;;  %v2277_v36 = vadd.f32 %v2261_v22, %v2245_v48  ;;  %v2890_v25 = vpop.f32.mrb[36].mxu0 }
 0x46c   : > { %v2741_v37 = vpack.c.bf16 %v2294_v54, %v2294_v54  ;;  %v2295_v55 = vmax.f32 %v2279_v26, 0.0  ;;  %v2227_v45 = vmul.f32 %v2890_v25, %v4368_v11  ;;  %v2179_v40 = vpop.f32.mrb[37].mxu0 }
 0x46d   : > { %v2739_v1 = vpack.c.bf16 %v2292_v34, %v2292_v34  ;;  %v2293_v62 = vmax.f32 %v2277_v36, 0.0  ;;  %v2225_v14 = vmul.f32 %v4368_v11, %v2179_v40  ;;  %v2891_v43 = vpop.f32.mrb[38].mxu0 }
 0x46e   : > { %2375 = vst.msk [vmem:[%s4051_s3 + $0x18] sm:$0xf] %vm2368_vm15, %v2741_v37  ;;  %v2742_v41 = vpack.c.bf16 %v2295_v55, %v2295_v55  ;;  %v2250_v24 = vadd.f32 %v4373_v42, %v2227_v45  ;;  %v2228_v46 = vmul.f32 %v2891_v43, %v4368_v11  ;;  %v2182_v56 = vpop.f32.mrb[39].mxu0 }
 0x46f   : > { %2373 = vst.msk [vmem:[%s4051_s3 + $0x10] sm:$0xf] %vm2368_vm15, %v2739_v1  ;;  %v2740_v57 = vpack.c.bf16 %v2293_v62, %v2293_v62  ;;  %v2248_v0 = vadd.f32 %v4373_v42, %v2225_v14  ;;  %v2226_v18 = vmul.f32 %v4368_v11, %v2182_v56 }
 0x470   : > { %2376 = vst.msk [vmem:[%s4051_s3 + $0x1c] sm:$0xf] %vm2368_vm15, %v2742_v41  ;;  %v2282_v2 = vadd.f32 %v2266_v58, %v2250_v24  ;;  %v2251_v3 = vadd.f32 %v4373_v42, %v2228_v46 }
 0x471   : > { %2374 = vst.msk [vmem:[%s4051_s3 + $0x14] sm:$0xf] %vm2368_vm15, %v2740_v57  ;;  %v2280_v4 = vadd.f32 %v2264_v20, %v2248_v0  ;;  %v2249_v50 = vadd.f32 %v4373_v42, %v2226_v18 }
 0x472   : > { %v2298_v19 = vmax.f32 %v2282_v2, 0.0  ;;  %v2283_v7 = vadd.f32 %v2267_v47, %v2251_v3 }
 0x473   : > { %v2296_v8 = vmax.f32 %v2280_v4, 0.0  ;;  %v2281_v29 = vadd.f32 %v2265_v35, %v2249_v50  ;;  %v2894_v38 = vpop.f32.mrb[40].mxu0 }
 0x474   : > { %v2745_v63 = vpack.c.bf16 %v2298_v19, %v2298_v19  ;;  %v2299_v49 = vmax.f32 %v2283_v7, 0.0  ;;  %v2231_v13 = vmul.f32 %v2894_v38, %v4368_v11  ;;  %v2195_v30 = vpop.f32.mrb[41].mxu0 }
 0x475   : > { %v2743_v6 = vpack.c.bf16 %v2296_v8, %v2296_v8  ;;  %v2297_v15 = vmax.f32 %v2281_v29, 0.0  ;;  %v2229_v12 = vmul.f32 %v4368_v11, %v2195_v30  ;;  %v2895_v39 = vpop.f32.mrb[42].mxu0 }
 0x476   : > { %2379 = vst.msk [vmem:[%s4051_s3 + $0x28] sm:$0xf] %vm2368_vm15, %v2745_v63  ;;  %v2746_v16 = vpack.c.bf16 %v2299_v49, %v2299_v49  ;;  %v2254_v59 = vadd.f32 %v4373_v42, %v2231_v13  ;;  %v2232_v9 = vmul.f32 %v2895_v39, %v4368_v11  ;;  %v2198_v21 = vpop.f32.mrb[43].mxu0 }
 0x477   : > { %2377 = vst.msk [vmem:[%s4051_s3 + $0x20] sm:$0xf] %vm2368_vm15, %v2743_v6  ;;  %v2744_v23 = vpack.c.bf16 %v2297_v15, %v2297_v15  ;;  %v2252_v10 = vadd.f32 %v4373_v42, %v2229_v12  ;;  %v2230_v27 = vmul.f32 %v4368_v11, %v2198_v21 }
 0x478   : > { %2380 = vst.msk [vmem:[%s4051_s3 + $0x2c] sm:$0xf] %vm2368_vm15, %v2746_v16  ;;  %v2286_v28 = vadd.f32 %v2270_v44, %v2254_v59  ;;  %v2255_v5 = vadd.f32 %v4373_v42, %v2232_v9 }
 0x479   : > { %2378 = vst.msk [vmem:[%s4051_s3 + $0x24] sm:$0xf] %vm2368_vm15, %v2744_v23  ;;  %v2284_v52 = vadd.f32 %v2268_v31, %v2252_v10  ;;  %v2253_v60 = vadd.f32 %v4373_v42, %v2230_v27 }
 0x47a   : > { %v2302_v22 = vmax.f32 %v2286_v28, 0.0  ;;  %v2287_v32 = vadd.f32 %v2271_v17, %v2255_v5 }
 0x47b   : > { %v2300_v11 = vmax.f32 %v2284_v52, 0.0  ;;  %v2285_v51 = vadd.f32 %v2269_v61, %v2253_v60 }
 0x47c   : > { %v2749_v33 = vpack.c.bf16 %v2302_v22, %v2302_v22  ;;  %v2303_v53 = vmax.f32 %v2287_v32, 0.0 }
 0x47d   : > { %v2747_v48 = vpack.c.bf16 %v2300_v11, %v2300_v11  ;;  %v2301_v54 = vmax.f32 %v2285_v51, 0.0 }
 0x47e   : > { %2383 = vst.msk [vmem:[%s4051_s3 + $0x38] sm:$0xf] %vm2368_vm15, %v2749_v33  ;;  %v2750_v26 = vpack.c.bf16 %v2303_v53, %v2303_v53 }
 0x47f   : > { %2381 = vst.msk [vmem:[%s4051_s3 + $0x30] sm:$0xf] %vm2368_vm15, %v2747_v48  ;;  %v2748_v42 = vpack.c.bf16 %v2301_v54, %v2301_v54 }
 0x480   : > { %2384 = vst.msk [vmem:[%s4051_s3 + $0x3c] sm:$0xf] %vm2368_vm15, %v2750_v26 }
 0x481   : > { %2382 = vst.msk [vmem:[%s4051_s3 + $0x34] sm:$0xf] %vm2368_vm15, %v2748_v42 }
 0x482   : > { %3277 = shalt.err (!%p3274_p12)
}
 0x483   : > { %s3278_s3 = scalar_lea.hbm %s4455_s26, 1024  ;;  %s3282_s25 = scalar_lea.hbm %s4652_s14, 4096 }
 0x484   : > { %p3279_p4 = scmp.ne.s32.totalorder %s4455_s26, %s3278_s3  ;;  %p3283_p3 = scmp.lt.u32.totalorder %s4455_s26, %s4652_s14 }
 0x485   : > { %p3284_p5 = scmp.lt.u32.totalorder %s3282_s25, %s3278_s3  ;;  %p3286_p0 = scmp.lt.u32.totalorder %s3278_s3, %s4455_s26 }
 0x486   : > { %p3280_p10 = pnand %p3279_p4, %p4653_p11 }
 0x487   : > { %p3285_p8 = por %p3284_p5, %p3283_p3 }
 0x488   : > { %p3281_p13 = pneg %p3280_p10 }
 0x489   : > { %p3287_p6 = por %p3286_p0, %p3285_p8 }
 0x48b   : > { %p3288_p7 = pnand %p3287_p6, %p3281_p13 }
 0x48d   : > { %3291 = shalt.err (!%p3288_p7)
}
 0x48e   : > { %s3434_s10 = smov 64  }
 0x48f   : > { %2945 = dma.vmem_to_hbm [thread:$0]  (%p4653_p11), %s4459_s0, 1024, %s4455_s26, %s2386_s8, %s3434_s10, %s3434_s10, %s3432_s7  }
 0x490 PF: > { %p2966_p1 = scmp.ge.s32.totalorder %s3420_s18, 2  ;;  %s2417_s2 = sand.u32 1, %s3392_s27  }
 0x491   : > { %p4654_p2 = scmp.ne.s32.totalorder %s4614_s20, 0  ;;  %s2418_s1 = scalar_lea.sflag [#allocation8], %s2417_s2 }
 0x493   : > { %p2962_p9 = pnand %p2966_p1, %p4654_p2 }
 0x495   : > { %3363 = dma.done.wait (!%p2962_p9), %s2418_s1, 1024  }
 0x496   : > { %3365 = vsyncadd (!%p2962_p9), %s2418_s1, 4294966272  ;;  %s43_s18 = sadd.s32 1, %s3420_s18   ;;  %s4656_s24 = sld [smem:[#allocation22_spill]] }
 0x497   : > { %p4495_p12 = scmp.ge.s32.totalorder %s43_s18, 6   ;;  %s4657_s25 = sld [smem:[#allocation23_spill]] }
 0x498   : > { %s4658_s26 = sld [smem:[#allocation32_spill]]  ;;  %s4659_s16 = sld [smem:[#allocation24_spill]] }
 0x499   : > { %s4660_s29 = sld [smem:[#allocation33_spill]]  ;;  %s4661_s30 = sld [smem:[#allocation27_spill]] }
 0x49a   : > { %s4662_s15 = sld [smem:[#allocation28_spill]]  ;;  %s4663_s20 = sld [smem:[#allocation29_spill]] }
 0x49b   : > { %s4664_s17 = sld [smem:[#allocation30_spill]]  ;;  %s4665_s1 = smov %s3372_s22 }
 0x49c   : > { %s4666_s22 = smov %s3376_s23  ;;  %s4667_s23 = smov %s3787_s9 }
 0x49d   : > { %s4668_s27 = smov %s3396_s28  ;;  %42 = sbr.rel (!%p4495_p12) target bundleno = 41 (0x29), region = 149 }
 0x49e   : > { %s4669_s28 = smov %s4659_s16 }
 0x4a0   : > { %s4670_s16 = smov %s4663_s20 }
 0x4a4   :  { %2423 = vsyncpa [#allocation7], 1 }
 0x4a5   :  { %2425 = vsyncpa [#allocation7 + $0x1], 1 }
 0x4a6   :  { %2426 = vsyncpa [#allocation10], 1 }
 0x4a7   :  { %2428 = vsyncpa [#allocation10 + $0x1], 1 }
 0x4a8   :  { %2429 = vsyncpa [#allocation8], 1 }
 0x4a9   :  { %2431 = vsyncpa [#allocation8 + $0x1], 1 }

</bundles_post_ra>
